<compile_context>
chip_gen: v7x
topology: tpu7x:2x2x1
jax: 0.10.0
libtpu: 0.0.40
codegen_flags: <defaults>
</compile_context>

<pallas_src>
import functools

import jax
import jax.numpy as jnp
from jax.experimental import pallas as pl
from jax.experimental.pallas import tpu as pltpu

NUM_GNN_LAYERS = 4
NORM_EPS = 1e-12           # torch.nn.functional.normalize default eps
_EPS2 = NORM_EPS * NORM_EPS


def _round_up(x, m):
    return (x + m - 1) // m * m


def _vmem_budget_bytes():
    """Per-core VMEM budget derived from the actual part (v5e/v6e: 128 MiB,
    v7x: 64 MiB per core), with headroom left for Mosaic scratch."""
    cap = 64 * 1024 * 1024
    try:
        info = pltpu.get_tpu_info()
        cap = int(getattr(info, "vmem_capacity_bytes", cap)) or cap
    except Exception:
        pass
    return (cap * 3) // 4


def _pick_row_tile(n, dp, budget):
    """Largest destination-row tile whose per-layer working set fits budget."""
    n8 = _round_up(max(n, 8), 8)
    resident = 2 * (2 * n8 * dp * 2)          # hn_ones + h_ones, double-buffered bf16
    for tm in (512, 256, 128, 64, 32, 16, 8):
        if tm > n8:
            continue
        n_pad = _round_up(n, max(tm, 128))    # keep lane axis 128-aligned too
        work = (2 * tm * n_pad                # int8 adjacency tile, double-buffered
                + 2 * 2 * tm * dp * 2         # two bf16 output tiles, double-buffered
                + 3 * tm * n_pad * 4          # f32 score / exp / p temporaries
                + 8 * tm * dp)                # small epilogue temporaries
        if resident + work + (2 << 20) <= budget:
            return tm, n_pad
    return 8, _round_up(max(n, 8), 128)


# --------------------------------------------------------------------------
# Prologue: build [normalize(h)|1|0] and [h|1|0] (bf16) from the raw features.
# --------------------------------------------------------------------------
def _prep_kernel(h_ref, hn_out_ref, hsrc_out_ref, *, d):
    h = h_ref[...]                                            # (TM, Dp) f32
    col = jax.lax.broadcasted_iota(jnp.int32, (1, h.shape[1]), 1)
    one_col = col == d
    ssq = jnp.sum(h * h, axis=-1, keepdims=True)
    rnorm = jax.lax.rsqrt(jnp.maximum(ssq, _EPS2))            # F.normalize semantics
    hsrc_out_ref[...] = jnp.where(one_col, 1.0, h).astype(jnp.bfloat16)
    hn_out_ref[...] = jnp.where(one_col, 1.0, h * rnorm).astype(jnp.bfloat16)


def _prepare(h_pad, *, d, tm):
    n_pad, dp = h_pad.shape
    kernel = functools.partial(_prep_kernel, d=d)
    return pl.pallas_call(
        kernel,
        out_shape=(jax.ShapeDtypeStruct((n_pad, dp), jnp.bfloat16),
                   jax.ShapeDtypeStruct((n_pad, dp), jnp.bfloat16)),
        grid=(n_pad // tm,),
        in_specs=[pl.BlockSpec((tm, dp), lambda t: (t, 0))],
        out_specs=(pl.BlockSpec((tm, dp), lambda t: (t, 0)),
                   pl.BlockSpec((tm, dp), lambda t: (t, 0))),
        compiler_params=pltpu.CompilerParams(
            dimension_semantics=("parallel",)),
    )(h_pad)


# --------------------------------------------------------------------------
# One AGNNConv layer + ReLU, with fused epilogue producing the next layer's
# operands.
# --------------------------------------------------------------------------
def _agnn_layer_kernel(adj_ref, hn_ref, hsrc_ref, scale_ref,
                       hn_out_ref, hsrc_out_ref, *, d):
    # adj_ref  : VMEM (TM, N)  int8  adjacency row tile (dest rows x src cols)
    # hn_ref   : VMEM (N, Dp)  bf16  [ normalize(h) | 1 | 0 ]   (resident)
    # hsrc_ref : VMEM (N, Dp)  bf16  [ h            | 1 | 0 ]   (resident)
    # scale_ref: VMEM (1, Dp)  bf16  [ beta .. beta | -|beta| | 0 ]
    # outputs  : VMEM (TM, Dp) bf16  next layer's hn_ones / h_ones row tiles
    tm, dp = hn_out_ref.shape
    row0 = pl.multiple_of(pl.program_id(0) * tm, tm)

    # Destination rows are sliced from the already-resident hn_ones block (no
    # separate per-tile feature DMA).  beta folds into the feature columns and
    # the stabilizer -|beta| into the ones column, so the cosine matmul yields
    # e = beta * <hn_i, hn_j> - |beta| <= 0 directly.
    lhs = hn_ref[pl.ds(row0, tm), :] * scale_ref[...]          # (TM, Dp) bf16
    e = jax.lax.dot_general(
        lhs, hn_ref[...],
        dimension_numbers=(((1,), (1,)), ((), ())),
        preferred_element_type=jnp.float32)                    # (TM, N) f32

    # Masked softmax numerator: exp(e) <= 1 by construction (the constant
    # -|beta| shift cancels in the normalization), so no row-max pass is
    # needed; isolated / padded rows stay exactly zero.
    p = jnp.where(adj_ref[...] != 0, jnp.exp(e), 0.0).astype(jnp.bfloat16)

    # [agg | s] = p @ [h | 1]: the softmax denominator rides along in column d
    # of the aggregation matmul (no explicit cross-lane row-sum over (TM, N)).
    agg = jnp.dot(p, hsrc_ref[...], preferred_element_type=jnp.float32)  # (TM, Dp)

    s = agg[:, d:d + 1]                                        # (TM, 1)
    inv = jnp.where(s > 0.0, 1.0 / s, 0.0)

    col = jax.lax.broadcasted_iota(jnp.int32, (1, dp), 1)
    feat_col = col < d
    one_col = col == d

    # Normalize the softmax, apply ReLU, zero the padding / ones columns.
    h_new = jnp.where(feat_col, jnp.maximum(agg * inv, 0.0), 0.0)  # (TM, Dp) f32

    # Fused epilogue: emit the next layer's operands so the row-wise L2
    # normalization happens once per layer (not once per row tile) and h is
    # carried between layers in bf16.
    ssq = jnp.sum(h_new * h_new, axis=-1, keepdims=True)
    rnorm = jax.lax.rsqrt(jnp.maximum(ssq, _EPS2))
    hsrc_out_ref[...] = jnp.where(one_col, 1.0, h_new).astype(jnp.bfloat16)
    hn_out_ref[...] = jnp.where(one_col, 1.0, h_new * rnorm).astype(jnp.bfloat16)


def _agnn_layer(adj_pad, hn_ones, h_ones, col_scale, *, d, tm, vmem_limit):
    n_pad, dp = hn_ones.shape
    kernel = functools.partial(_agnn_layer_kernel, d=d)
    cost = pl.CostEstimate(
        flops=4 * n_pad * n_pad * dp,                 # cosine + aggregation matmuls
        transcendentals=n_pad * n_pad + 2 * n_pad,    # exp + rsqrt
        bytes_accessed=(n_pad * n_pad                 # int8 adjacency
                        + 4 * n_pad * dp * 2          # bf16 hn/h reads + writes
                        + 2 * dp),
    )
    return pl.pallas_call(
        kernel,
        out_shape=(jax.ShapeDtypeStruct((n_pad, dp), jnp.bfloat16),
                   jax.ShapeDtypeStruct((n_pad, dp), jnp.bfloat16)),
        grid=(n_pad // tm,),
        in_specs=[
            pl.BlockSpec((tm, n_pad), lambda t: (t, 0)),   # adjacency row tile (int8)
            pl.BlockSpec((n_pad, dp), lambda t: (0, 0)),   # hn_ones (resident)
            pl.BlockSpec((n_pad, dp), lambda t: (0, 0)),   # h_ones  (resident)
            pl.BlockSpec((1, dp), lambda t: (0, 0)),       # per-layer column scale
        ],
        out_specs=(pl.BlockSpec((tm, dp), lambda t: (t, 0)),
                   pl.BlockSpec((tm, dp), lambda t: (t, 0))),
        compiler_params=pltpu.CompilerParams(
            dimension_semantics=("parallel",),
            vmem_limit_bytes=int(vmem_limit),
        ),
        cost_estimate=cost,
    )(adj_pad, hn_ones, h_ones, col_scale)


# --------------------------------------------------------------------------
# Full operator: NUM_GNN_LAYERS AGNNConv layers, ReLU after each.
# --------------------------------------------------------------------------
def agnn_conv_op(adj, feats, betas):
    """adj  : [N, N] dense adjacency (adj[i, j] > 0 means edge j -> i)
       feats: [N, D] node features
       betas: [NUM_GNN_LAYERS] per-layer beta parameters."""
    n, d = feats.shape
    assert adj.shape == (n, n)
    dp = _round_up(d + 1, 128)                # lane-dense, +1 column for the ones/sum fold
    budget = _vmem_budget_bytes()
    tm, n_pad = _pick_row_tile(n, dp, budget)

    adj_mask = (adj > 0).astype(jnp.int8)     # only the sign is used; 4x smaller than f32
    adj_pad = jnp.pad(adj_mask, ((0, n_pad - n), (0, n_pad - n)))
    h_pad = jnp.pad(feats.astype(jnp.float32), ((0, n_pad - n), (0, dp - d)))

    hn_ones, h_ones = _prepare(h_pad, d=d, tm=tm)

    col = jnp.arange(dp)
    for layer in range(NUM_GNN_LAYERS):
        beta = betas[layer].astype(jnp.float32)
        col_scale = jnp.where(col < d, beta,
                              jnp.where(col == d, -jnp.abs(beta), 0.0))
        col_scale = col_scale.reshape(1, dp).astype(jnp.bfloat16)
        hn_ones, h_ones = _agnn_layer(adj_pad, hn_ones, h_ones, col_scale,
                                      d=d, tm=tm, vmem_limit=budget)

    return h_ones[:n, :d].astype(feats.dtype)


def agnn_reference(adj, feats, betas):
    """Pure-JAX (f32) reference for correctness checking."""
    h = feats.astype(jnp.float32)
    mask = adj > 0.0
    for layer in range(NUM_GNN_LAYERS):
        norm = jnp.sqrt(jnp.sum(h * h, axis=-1, keepdims=True))
        hn = h / jnp.maximum(norm, NORM_EPS)
        e = betas[layer] * (hn @ hn.T)
        e = jnp.where(mask, e, -jnp.inf)
        m = jnp.max(e, axis=-1, keepdims=True)
        m = jnp.where(jnp.isfinite(m), m, 0.0)
        p = jnp.where(mask, jnp.exp(e - m), 0.0)
        s = jnp.sum(p, axis=-1, keepdims=True)
        p = jnp.where(s > 0.0, p / s, 0.0)
        h = jnp.maximum(p @ h, 0.0)
    return h


if __name__ == "__main__":
    N, D = 128, 32  # small graph: 128 nodes, 32-dim features

    key = jax.random.PRNGKey(0)
    k_feat, k_adj = jax.random.split(key)

    feats = jax.random.normal(k_feat, (N, D), dtype=jnp.float32)

    # Random sparse-ish adjacency with self-loops (every node has >= 1 in-edge).
    adj = (jax.random.uniform(k_adj, (N, N)) < 0.1).astype(jnp.float32)
    adj = jnp.maximum(adj, jnp.eye(N, dtype=jnp.float32))

    # Parameters: agnn_conv_init_beta = 1.0 for each of the 4 layers
    # (learnable in torch; deterministic synthetic init here).
    betas = jnp.ones((NUM_GNN_LAYERS,), dtype=jnp.float32)

    out = jax.jit(agnn_conv_op)(adj, feats, betas)
    out = jax.block_until_ready(out)

    ref = agnn_reference(adj, feats, betas)
    assert out.shape == (N, D)
    # bf16 MXU operands + bf16 inter-layer carry -> compare against the f32
    # reference with a correspondingly looser tolerance.
    assert jnp.allclose(out, ref, atol=5e-2, rtol=5e-2), "mismatch vs reference"

    print("KERNEL_OK")
</pallas_src>

<mosaic_0001>
module attributes {stable_mosaic.version = 11 : i64} {
  func.func @_prep_kernel(%arg0: i32, %arg1: memref<128x128xf32, #tpu.memory_space<vmem>>, %arg2: memref<128x128xbf16, #tpu.memory_space<vmem>>, %arg3: memref<128x128xbf16, #tpu.memory_space<vmem>>) attributes {dimension_semantics = [#tpu.dimension_semantics<parallel>], iteration_bounds = array<i64: 1>, scalar_prefetch = 0 : i64, scratch_operands = 0 : i64, tpu.core_type = #tpu.core_type<tc>, window_params = [{transform_indices = @transform_0, window_bounds = array<i64: 128, 128>}, {transform_indices = @transform_1, window_bounds = array<i64: 128, 128>}, {transform_indices = @transform_2, window_bounds = array<i64: 128, 128>}]} {
    %c0 = arith.constant 0 : index
    %c0_0 = arith.constant 0 : index
    %0 = vector.load %arg1[%c0, %c0_0] : memref<128x128xf32, #tpu.memory_space<vmem>>, vector<128x128xf32>
    %1 = tpu.iota {dimensions = array<i32: 1>} : vector<1x128xi32>
    %c32_i32 = arith.constant 32 : i32
    %2 = vector.broadcast %c32_i32 : i32 to vector<1x128xi32>
    %3 = arith.cmpi eq, %1, %2 : vector<1x128xi32>
    %4 = arith.mulf %0, %0 : vector<128x128xf32>
    %cst = arith.constant dense<0.000000e+00> : vector<128xf32>
    %5 = vector.multi_reduction <add>, %4, %cst [1] : vector<128x128xf32> to vector<128xf32>
    %6 = vector.shape_cast %5 : vector<128xf32> to vector<128x1xf32>
    %cst_1 = arith.constant 1.000000e-24 : f32
    %7 = vector.broadcast %cst_1 : f32 to vector<128x1xf32>
    %8 = arith.maximumf %6, %7 : vector<128x1xf32>
    %9 = math.rsqrt %8 : vector<128x1xf32>
    %cst_2 = arith.constant 1.000000e+00 : f32
    %10 = vector.shape_cast %3 : vector<1x128xi1> to vector<1x128xi1>
    %11 = vector.broadcast %10 : vector<1x128xi1> to vector<128x128xi1>
    %12 = vector.broadcast %cst_2 : f32 to vector<128x128xf32>
    %13 = arith.select %11, %12, %0 : vector<128x128xi1>, vector<128x128xf32>
    %14 = arith.truncf %13 : vector<128x128xf32> to vector<128x128xbf16>
    %c0_3 = arith.constant 0 : index
    %c0_4 = arith.constant 0 : index
    %15 = vector.load %arg3[%c0_3, %c0_4] : memref<128x128xbf16, #tpu.memory_space<vmem>>, vector<128x128xbf16>
    tpu.vector_store %arg3[%c0_3, %c0_4], %14 {strides = array<i32>} : memref<128x128xbf16, #tpu.memory_space<vmem>>, vector<128x128xbf16>,
    %16 = vector.broadcast %9 : vector<128x1xf32> to vector<128x128xf32>
    %17 = arith.mulf %0, %16 : vector<128x128xf32>
    %cst_5 = arith.constant 1.000000e+00 : f32
    %18 = vector.shape_cast %3 : vector<1x128xi1> to vector<1x128xi1>
    %19 = vector.broadcast %18 : vector<1x128xi1> to vector<128x128xi1>
    %20 = vector.broadcast %cst_5 : f32 to vector<128x128xf32>
    %21 = arith.select %19, %20, %17 : vector<128x128xi1>, vector<128x128xf32>
    %22 = arith.truncf %21 : vector<128x128xf32> to vector<128x128xbf16>
    %c0_6 = arith.constant 0 : index
    %c0_7 = arith.constant 0 : index
    %23 = vector.load %arg2[%c0_6, %c0_7] : memref<128x128xbf16, #tpu.memory_space<vmem>>, vector<128x128xbf16>
    tpu.vector_store %arg2[%c0_6, %c0_7], %22 {strides = array<i32>} : memref<128x128xbf16, #tpu.memory_space<vmem>>, vector<128x128xbf16>,
    return
  }
  func.func @transform_0(%arg0: i32) -> (i32, i32) {
    %c0_i32 = arith.constant 0 : i32
    %c0_i32_0 = arith.constant 0 : i32
    return %arg0, %c0_i32 : i32, i32
  }
  func.func @transform_1(%arg0: i32) -> (i32, i32) {
    %c0_i32 = arith.constant 0 : i32
    %c0_i32_0 = arith.constant 0 : i32
    return %arg0, %c0_i32 : i32, i32
  }
  func.func @transform_2(%arg0: i32) -> (i32, i32) {
    %c0_i32 = arith.constant 0 : i32
    %c0_i32_0 = arith.constant 0 : i32
    return %arg0, %c0_i32 : i32, i32
  }
}

module attributes {stable_mosaic.version = 11 : i64} {
  func.func @_agnn_layer_kernel(%arg0: i32, %arg1: memref<128x128xi8, #tpu.memory_space<vmem>>, %arg2: memref<128x128xbf16, #tpu.memory_space<vmem>>, %arg3: memref<128x128xbf16, #tpu.memory_space<vmem>>, %arg4: memref<1x128xbf16, #tpu.memory_space<vmem>>, %arg5: memref<128x128xbf16, #tpu.memory_space<vmem>>, %arg6: memref<128x128xbf16, #tpu.memory_space<vmem>>) attributes {dimension_semantics = [#tpu.dimension_semantics<parallel>], iteration_bounds = array<i64: 1>, scalar_prefetch = 0 : i64, scratch_operands = 0 : i64, tpu.core_type = #tpu.core_type<tc>, window_params = [{transform_indices = @transform_0, window_bounds = array<i64: 128, 128>}, {pipeline_mode = #tpu.pipeline_mode<synchronous>, transform_indices = @transform_1, window_bounds = array<i64: 128, 128>}, {pipeline_mode = #tpu.pipeline_mode<synchronous>, transform_indices = @transform_2, window_bounds = array<i64: 128, 128>}, {pipeline_mode = #tpu.pipeline_mode<synchronous>, transform_indices = @transform_3, window_bounds = array<i64: 1, 128>}, {transform_indices = @transform_4, window_bounds = array<i64: 128, 128>}, {transform_indices = @transform_5, window_bounds = array<i64: 128, 128>}]} {
    %c128_i32 = arith.constant 128 : i32
    %0 = arith.muli %arg0, %c128_i32 : i32
    %1 = tpu.assume_multiple %0, 128 : i32
    %2 = arith.index_cast %1 : i32 to index
    %c0 = arith.constant 0 : index
    %3 = vector.load %arg2[%2, %c0] : memref<128x128xbf16, #tpu.memory_space<vmem>>, vector<128x128xbf16>
    %c0_0 = arith.constant 0 : index
    %c0_1 = arith.constant 0 : index
    %4 = vector.load %arg4[%c0_0, %c0_1] : memref<1x128xbf16, #tpu.memory_space<vmem>>, vector<1x128xbf16>
    %5 = vector.broadcast %4 : vector<1x128xbf16> to vector<128x128xbf16>
    %6 = arith.mulf %3, %5 : vector<128x128xbf16>
    %c0_2 = arith.constant 0 : index
    %c0_3 = arith.constant 0 : index
    %7 = vector.load %arg2[%c0_2, %c0_3] : memref<128x128xbf16, #tpu.memory_space<vmem>>, vector<128x128xbf16>
    %cst = arith.constant dense<0.000000e+00> : vector<128x128xf32>
    %8 = tpu.matmul %6, %7, %cst {dimension_numbers = #tpu.dot_dimension_numbers<[1], [1], [0], [0], [0, 0, 1, 0], [], []>} : vector<128x128xbf16>, vector<128x128xbf16>, vector<128x128xf32> -> vector<128x128xf32>
    %c0_4 = arith.constant 0 : index
    %c0_5 = arith.constant 0 : index
    %9 = vector.load %arg1[%c0_4, %c0_5] : memref<128x128xi8, #tpu.memory_space<vmem>>, vector<128x128xi8>
    %c0_i8 = arith.constant 0 : i8
    %10 = vector.broadcast %c0_i8 : i8 to vector<128x128xi8>
    %11 = arith.cmpi ne, %9, %10 : vector<128x128xi8>
    %12 = math.exp %8 : vector<128x128xf32>
    %cst_6 = arith.constant 0.000000e+00 : f32
    %13 = vector.broadcast %cst_6 : f32 to vector<128x128xf32>
    %14 = arith.select %11, %12, %13 : vector<128x128xi1>, vector<128x128xf32>
    %15 = arith.truncf %14 : vector<128x128xf32> to vector<128x128xbf16>
    %c0_7 = arith.constant 0 : index
    %c0_8 = arith.constant 0 : index
    %16 = vector.load %arg3[%c0_7, %c0_8] : memref<128x128xbf16, #tpu.memory_space<vmem>>, vector<128x128xbf16>
    %cst_9 = arith.constant dense<0.000000e+00> : vector<128x128xf32>
    %17 = tpu.matmul %15, %16, %cst_9 {dimension_numbers = #tpu.dot_dimension_numbers<[1], [0], [0], [1], [0, 0, 1, 1], [], []>} : vector<128x128xbf16>, vector<128x128xbf16>, vector<128x128xf32> -> vector<128x128xf32>
    %18 = vector.extract_strided_slice %17 {offsets = [0, 32], sizes = [128, 1], strides = [1, 1]} : vector<128x128xf32> to vector<128x1xf32>
    %cst_10 = arith.constant 0.000000e+00 : f32
    %19 = vector.broadcast %cst_10 : f32 to vector<128x1xf32>
    %20 = arith.cmpf ogt, %18, %19 : vector<128x1xf32>
    %cst_11 = arith.constant 1.000000e+00 : f32
    %21 = vector.broadcast %cst_11 : f32 to vector<128x1xf32>
    %22 = arith.divf %21, %18 : vector<128x1xf32>
    %cst_12 = arith.constant 0.000000e+00 : f32
    %23 = vector.broadcast %cst_12 : f32 to vector<128x1xf32>
    %24 = arith.select %20, %22, %23 : vector<128x1xi1>, vector<128x1xf32>
    %25 = tpu.iota {dimensions = array<i32: 1>} : vector<1x128xi32>
    %c32_i32 = arith.constant 32 : i32
    %26 = vector.broadcast %c32_i32 : i32 to vector<1x128xi32>
    %27 = arith.cmpi slt, %25, %26 : vector<1x128xi32>
    %c32_i32_13 = arith.constant 32 : i32
    %28 = vector.broadcast %c32_i32_13 : i32 to vector<1x128xi32>
    %29 = arith.cmpi eq, %25, %28 : vector<1x128xi32>
    %30 = vector.broadcast %24 : vector<128x1xf32> to vector<128x128xf32>
    %31 = arith.mulf %17, %30 : vector<128x128xf32>
    %cst_14 = arith.constant 0.000000e+00 : f32
    %32 = vector.broadcast %cst_14 : f32 to vector<128x128xf32>
    %33 = arith.maximumf %31, %32 : vector<128x128xf32>
    %cst_15 = arith.constant 0.000000e+00 : f32
    %34 = vector.shape_cast %27 : vector<1x128xi1> to vector<1x128xi1>
    %35 = vector.broadcast %34 : vector<1x128xi1> to vector<128x128xi1>
    %36 = vector.broadcast %cst_15 : f32 to vector<128x128xf32>
    %37 = arith.select %35, %33, %36 : vector<128x128xi1>, vector<128x128xf32>
    %38 = arith.mulf %37, %37 : vector<128x128xf32>
    %cst_16 = arith.constant dense<0.000000e+00> : vector<128xf32>
    %39 = vector.multi_reduction <add>, %38, %cst_16 [1] : vector<128x128xf32> to vector<128xf32>
    %40 = vector.shape_cast %39 : vector<128xf32> to vector<128x1xf32>
    %cst_17 = arith.constant 1.000000e-24 : f32
    %41 = vector.broadcast %cst_17 : f32 to vector<128x1xf32>
    %42 = arith.maximumf %40, %41 : vector<128x1xf32>
    %43 = math.rsqrt %42 : vector<128x1xf32>
    %cst_18 = arith.constant 1.000000e+00 : f32
    %44 = vector.shape_cast %29 : vector<1x128xi1> to vector<1x128xi1>
    %45 = vector.broadcast %44 : vector<1x128xi1> to vector<128x128xi1>
    %46 = vector.broadcast %cst_18 : f32 to vector<128x128xf32>
    %47 = arith.select %45, %46, %37 : vector<128x128xi1>, vector<128x128xf32>
    %48 = arith.truncf %47 : vector<128x128xf32> to vector<128x128xbf16>
    %c0_19 = arith.constant 0 : index
    %c0_20 = arith.constant 0 : index
    %49 = vector.load %arg6[%c0_19, %c0_20] : memref<128x128xbf16, #tpu.memory_space<vmem>>, vector<128x128xbf16>
    tpu.vector_store %arg6[%c0_19, %c0_20], %48 {strides = array<i32>} : memref<128x128xbf16, #tpu.memory_space<vmem>>, vector<128x128xbf16>,
    %50 = vector.broadcast %43 : vector<128x1xf32> to vector<128x128xf32>
    %51 = arith.mulf %37, %50 : vector<128x128xf32>
    %cst_21 = arith.constant 1.000000e+00 : f32
    %52 = vector.shape_cast %29 : vector<1x128xi1> to vector<1x128xi1>
    %53 = vector.broadcast %52 : vector<1x128xi1> to vector<128x128xi1>
    %54 = vector.broadcast %cst_21 : f32 to vector<128x128xf32>
    %55 = arith.select %53, %54, %51 : vector<128x128xi1>, vector<128x128xf32>
    %56 = arith.truncf %55 : vector<128x128xf32> to vector<128x128xbf16>
    %c0_22 = arith.constant 0 : index
    %c0_23 = arith.constant 0 : index
    %57 = vector.load %arg5[%c0_22, %c0_23] : memref<128x128xbf16, #tpu.memory_space<vmem>>, vector<128x128xbf16>
    tpu.vector_store %arg5[%c0_22, %c0_23], %56 {strides = array<i32>} : memref<128x128xbf16, #tpu.memory_space<vmem>>, vector<128x128xbf16>,
    return
  }
  func.func @transform_0(%arg0: i32) -> (i32, i32) {
    %c0_i32 = arith.constant 0 : i32
    %c0_i32_0 = arith.constant 0 : i32
    return %arg0, %c0_i32 : i32, i32
  }
  func.func @transform_1(%arg0: i32) -> (i32, i32) {
    %c0_i32 = arith.constant 0 : i32
    %c0_i32_0 = arith.constant 0 : i32
    %c0_i32_1 = arith.constant 0 : i32
    return %c0_i32, %c0_i32_0 : i32, i32
  }
  func.func @transform_2(%arg0: i32) -> (i32, i32) {
    %c0_i32 = arith.constant 0 : i32
    %c0_i32_0 = arith.constant 0 : i32
    %c0_i32_1 = arith.constant 0 : i32
    return %c0_i32, %c0_i32_0 : i32, i32
  }
  func.func @transform_3(%arg0: i32) -> (i32, i32) {
    %c0_i32 = arith.constant 0 : i32
    %c0_i32_0 = arith.constant 0 : i32
    %c0_i32_1 = arith.constant 0 : i32
    return %c0_i32, %c0_i32_0 : i32, i32
  }
  func.func @transform_4(%arg0: i32) -> (i32, i32) {
    %c0_i32 = arith.constant 0 : i32
    %c0_i32_0 = arith.constant 0 : i32
    return %arg0, %c0_i32 : i32, i32
  }
  func.func @transform_5(%arg0: i32) -> (i32, i32) {
    %c0_i32 = arith.constant 0 : i32
    %c0_i32_0 = arith.constant 0 : i32
    return %arg0, %c0_i32 : i32, i32
  }
}

module attributes {stable_mosaic.version = 11 : i64} {
  func.func @_agnn_layer_kernel(%arg0: i32, %arg1: memref<128x128xi8, #tpu.memory_space<vmem>>, %arg2: memref<128x128xbf16, #tpu.memory_space<vmem>>, %arg3: memref<128x128xbf16, #tpu.memory_space<vmem>>, %arg4: memref<1x128xbf16, #tpu.memory_space<vmem>>, %arg5: memref<128x128xbf16, #tpu.memory_space<vmem>>, %arg6: memref<128x128xbf16, #tpu.memory_space<vmem>>) attributes {dimension_semantics = [#tpu.dimension_semantics<parallel>], iteration_bounds = array<i64: 1>, scalar_prefetch = 0 : i64, scratch_operands = 0 : i64, tpu.core_type = #tpu.core_type<tc>, window_params = [{transform_indices = @transform_0, window_bounds = array<i64: 128, 128>}, {pipeline_mode = #tpu.pipeline_mode<synchronous>, transform_indices = @transform_1, window_bounds = array<i64: 128, 128>}, {pipeline_mode = #tpu.pipeline_mode<synchronous>, transform_indices = @transform_2, window_bounds = array<i64: 128, 128>}, {pipeline_mode = #tpu.pipeline_mode<synchronous>, transform_indices = @transform_3, window_bounds = array<i64: 1, 128>}, {transform_indices = @transform_4, window_bounds = array<i64: 128, 128>}, {transform_indices = @transform_5, window_bounds = array<i64: 128, 128>}]} {
    %c128_i32 = arith.constant 128 : i32
    %0 = arith.muli %arg0, %c128_i32 : i32
    %1 = tpu.assume_multiple %0, 128 : i32
    %2 = arith.index_cast %1 : i32 to index
    %c0 = arith.constant 0 : index
    %3 = vector.load %arg2[%2, %c0] : memref<128x128xbf16, #tpu.memory_space<vmem>>, vector<128x128xbf16>
    %c0_0 = arith.constant 0 : index
    %c0_1 = arith.constant 0 : index
    %4 = vector.load %arg4[%c0_0, %c0_1] : memref<1x128xbf16, #tpu.memory_space<vmem>>, vector<1x128xbf16>
    %5 = vector.broadcast %4 : vector<1x128xbf16> to vector<128x128xbf16>
    %6 = arith.mulf %3, %5 : vector<128x128xbf16>
    %c0_2 = arith.constant 0 : index
    %c0_3 = arith.constant 0 : index
    %7 = vector.load %arg2[%c0_2, %c0_3] : memref<128x128xbf16, #tpu.memory_space<vmem>>, vector<128x128xbf16>
    %cst = arith.constant dense<0.000000e+00> : vector<128x128xf32>
    %8 = tpu.matmul %6, %7, %cst {dimension_numbers = #tpu.dot_dimension_numbers<[1], [1], [0], [0], [0, 0, 1, 0], [], []>} : vector<128x128xbf16>, vector<128x128xbf16>, vector<128x128xf32> -> vector<128x128xf32>
    %c0_4 = arith.constant 0 : index
    %c0_5 = arith.constant 0 : index
    %9 = vector.load %arg1[%c0_4, %c0_5] : memref<128x128xi8, #tpu.memory_space<vmem>>, vector<128x128xi8>
    %c0_i8 = arith.constant 0 : i8
    %10 = vector.broadcast %c0_i8 : i8 to vector<128x128xi8>
    %11 = arith.cmpi ne, %9, %10 : vector<128x128xi8>
    %12 = math.exp %8 : vector<128x128xf32>
    %cst_6 = arith.constant 0.000000e+00 : f32
    %13 = vector.broadcast %cst_6 : f32 to vector<128x128xf32>
    %14 = arith.select %11, %12, %13 : vector<128x128xi1>, vector<128x128xf32>
    %15 = arith.truncf %14 : vector<128x128xf32> to vector<128x128xbf16>
    %c0_7 = arith.constant 0 : index
    %c0_8 = arith.constant 0 : index
    %16 = vector.load %arg3[%c0_7, %c0_8] : memref<128x128xbf16, #tpu.memory_space<vmem>>, vector<128x128xbf16>
    %cst_9 = arith.constant dense<0.000000e+00> : vector<128x128xf32>
    %17 = tpu.matmul %15, %16, %cst_9 {dimension_numbers = #tpu.dot_dimension_numbers<[1], [0], [0], [1], [0, 0, 1, 1], [], []>} : vector<128x128xbf16>, vector<128x128xbf16>, vector<128x128xf32> -> vector<128x128xf32>
    %18 = vector.extract_strided_slice %17 {offsets = [0, 32], sizes = [128, 1], strides = [1, 1]} : vector<128x128xf32> to vector<128x1xf32>
    %cst_10 = arith.constant 0.000000e+00 : f32
    %19 = vector.broadcast %cst_10 : f32 to vector<128x1xf32>
    %20 = arith.cmpf ogt, %18, %19 : vector<128x1xf32>
    %cst_11 = arith.constant 1.000000e+00 : f32
    %21 = vector.broadcast %cst_11 : f32 to vector<128x1xf32>
    %22 = arith.divf %21, %18 : vector<128x1xf32>
    %cst_12 = arith.constant 0.000000e+00 : f32
    %23 = vector.broadcast %cst_12 : f32 to vector<128x1xf32>
    %24 = arith.select %20, %22, %23 : vector<128x1xi1>, vector<128x1xf32>
    %25 = tpu.iota {dimensions = array<i32: 1>} : vector<1x128xi32>
    %c32_i32 = arith.constant 32 : i32
    %26 = vector.broadcast %c32_i32 : i32 to vector<1x128xi32>
    %27 = arith.cmpi slt, %25, %26 : vector<1x128xi32>
    %c32_i32_13 = arith.constant 32 : i32
    %28 = vector.broadcast %c32_i32_13 : i32 to vector<1x128xi32>
    %29 = arith.cmpi eq, %25, %28 : vector<1x128xi32>
    %30 = vector.broadcast %24 : vector<128x1xf32> to vector<128x128xf32>
    %31 = arith.mulf %17, %30 : vector<128x128xf32>
    %cst_14 = arith.constant 0.000000e+00 : f32
    %32 = vector.broadcast %cst_14 : f32 to vector<128x128xf32>
    %33 = arith.maximumf %31, %32 : vector<128x128xf32>
    %cst_15 = arith.constant 0.000000e+00 : f32
    %34 = vector.shape_cast %27 : vector<1x128xi1> to vector<1x128xi1>
    %35 = vector.broadcast %34 : vector<1x128xi1> to vector<128x128xi1>
    %36 = vector.broadcast %cst_15 : f32 to vector<128x128xf32>
    %37 = arith.select %35, %33, %36 : vector<128x128xi1>, vector<128x128xf32>
    %38 = arith.mulf %37, %37 : vector<128x128xf32>
    %cst_16 = arith.constant dense<0.000000e+00> : vector<128xf32>
    %39 = vector.multi_reduction <add>, %38, %cst_16 [1] : vector<128x128xf32> to vector<128xf32>
    %40 = vector.shape_cast %39 : vector<128xf32> to vector<128x1xf32>
    %cst_17 = arith.constant 1.000000e-24 : f32
    %41 = vector.broadcast %cst_17 : f32 to vector<128x1xf32>
    %42 = arith.maximumf %40, %41 : vector<128x1xf32>
    %43 = math.rsqrt %42 : vector<128x1xf32>
    %cst_18 = arith.constant 1.000000e+00 : f32
    %44 = vector.shape_cast %29 : vector<1x128xi1> to vector<1x128xi1>
    %45 = vector.broadcast %44 : vector<1x128xi1> to vector<128x128xi1>
    %46 = vector.broadcast %cst_18 : f32 to vector<128x128xf32>
    %47 = arith.select %45, %46, %37 : vector<128x128xi1>, vector<128x128xf32>
    %48 = arith.truncf %47 : vector<128x128xf32> to vector<128x128xbf16>
    %c0_19 = arith.constant 0 : index
    %c0_20 = arith.constant 0 : index
    %49 = vector.load %arg6[%c0_19, %c0_20] : memref<128x128xbf16, #tpu.memory_space<vmem>>, vector<128x128xbf16>
    tpu.vector_store %arg6[%c0_19, %c0_20], %48 {strides = array<i32>} : memref<128x128xbf16, #tpu.memory_space<vmem>>, vector<128x128xbf16>,
    %50 = vector.broadcast %43 : vector<128x1xf32> to vector<128x128xf32>
    %51 = arith.mulf %37, %50 : vector<128x128xf32>
    %cst_21 = arith.constant 1.000000e+00 : f32
    %52 = vector.shape_cast %29 : vector<1x128xi1> to vector<1x128xi1>
    %53 = vector.broadcast %52 : vector<1x128xi1> to vector<128x128xi1>
    %54 = vector.broadcast %cst_21 : f32 to vector<128x128xf32>
    %55 = arith.select %53, %54, %51 : vector<128x128xi1>, vector<128x128xf32>
    %56 = arith.truncf %55 : vector<128x128xf32> to vector<128x128xbf16>
    %c0_22 = arith.constant 0 : index
    %c0_23 = arith.constant 0 : index
    %57 = vector.load %arg5[%c0_22, %c0_23] : memref<128x128xbf16, #tpu.memory_space<vmem>>, vector<128x128xbf16>
    tpu.vector_store %arg5[%c0_22, %c0_23], %56 {strides = array<i32>} : memref<128x128xbf16, #tpu.memory_space<vmem>>, vector<128x128xbf16>,
    return
  }
  func.func @transform_0(%arg0: i32) -> (i32, i32) {
    %c0_i32 = arith.constant 0 : i32
    %c0_i32_0 = arith.constant 0 : i32
    return %arg0, %c0_i32 : i32, i32
  }
  func.func @transform_1(%arg0: i32) -> (i32, i32) {
    %c0_i32 = arith.constant 0 : i32
    %c0_i32_0 = arith.constant 0 : i32
    %c0_i32_1 = arith.constant 0 : i32
    return %c0_i32, %c0_i32_0 : i32, i32
  }
  func.func @transform_2(%arg0: i32) -> (i32, i32) {
    %c0_i32 = arith.constant 0 : i32
    %c0_i32_0 = arith.constant 0 : i32
    %c0_i32_1 = arith.constant 0 : i32
    return %c0_i32, %c0_i32_0 : i32, i32
  }
  func.func @transform_3(%arg0: i32) -> (i32, i32) {
    %c0_i32 = arith.constant 0 : i32
    %c0_i32_0 = arith.constant 0 : i32
    %c0_i32_1 = arith.constant 0 : i32
    return %c0_i32, %c0_i32_0 : i32, i32
  }
  func.func @transform_4(%arg0: i32) -> (i32, i32) {
    %c0_i32 = arith.constant 0 : i32
    %c0_i32_0 = arith.constant 0 : i32
    return %arg0, %c0_i32 : i32, i32
  }
  func.func @transform_5(%arg0: i32) -> (i32, i32) {
    %c0_i32 = arith.constant 0 : i32
    %c0_i32_0 = arith.constant 0 : i32
    return %arg0, %c0_i32 : i32, i32
  }
}

</mosaic_0001>

<bundles_post_ra>
// kernel: agnn_conv_op.5
= control target key start
LH: loop header
LB: loop body
LE: loop exit
PB: predicated region body
PF: predicated region fallthrough
CT: control target
= control target key end

     0   :  { %v26_v0 = vlaneseq  ;;  %s791_s0 = inlined_call_operand.vmem [shape: f32[128,128], index: 0, kind: input, shape index: {}]   ;;  %s792_s2 = inlined_call_operand.vmem [shape: bf16[128,128], index: 2, kind: output, shape index: {1}]   ;;  %s793_s1 = inlined_call_operand.vmem [shape: bf16[128,128], index: 1, kind: output, shape index: {0}]  }
   0x1   :  { %v535_v1 = vld [vmem:[%s791_s0 + $0x10] sm:$0xff]  ;;  %v540_v2 = vld [vmem:[%s791_s0] sm:$0xff]  ;;  %v545_v3 = vld [vmem:[%s791_s0 + $0x18] sm:$0xff] }
   0x2   :  { %v547_v4 = vand.u32 127, %v26_v0  ;;  %v31_v5 = vmul.f32 %v535_v1, %v535_v1  ;;  %v29_v6 = vmul.f32 %v540_v2, %v540_v2  ;;  %v556_v7 = vld [vmem:[%s791_s0 + $0x8] sm:$0xff]  ;;  %v32_v8 = vmul.f32 %v545_v3, %v545_v3  ;;  %v583_v15 = vld [vmem:[%s791_s0 + $0x20] sm:$0xff]  ;;  %v594_v20 = vld [vmem:[%s791_s0 + $0x38] sm:$0xff] }
   0x3   :  { %v30_v9 = vmul.f32 %v556_v7, %v556_v7  ;;  %v578_v14 = vld [vmem:[%s791_s0 + $0x28] sm:$0xff]  ;;  %v599_v21 = vld [vmem:[%s791_s0 + $0x30] sm:$0xff]  ;;  %v618_v27 = vld [vmem:[%s791_s0 + $0x40] sm:$0xff]  ;;  %v33_v29 = vmul.f32 %v583_v15, %v583_v15  ;;  %v36_v45 = vmul.f32 %v594_v20, %v594_v20 }
   0x4   :  { %vm28_vm0 = vcmp.eq.s32.totalorder %v547_v4, 32  ;;  %49 = vadd.xlane.f32.xlu1 %v31_v5  ;;  %45 = vadd.xlane.f32.xlu0 %v29_v6  ;;  %v604_v22 = vld [vmem:[%s791_s0 + $0x48] sm:$0xff]  ;;  %v34_v28 = vmul.f32 %v578_v14, %v578_v14  ;;  %v636_v32 = vld [vmem:[%s791_s0 + $0x58] sm:$0xff]  ;;  %v641_v33 = vld [vmem:[%s791_s0 + $0x50] sm:$0xff]  ;;  %v35_v46 = vmul.f32 %v599_v21, %v599_v21  ;;  %v37_v51 = vmul.f32 %v618_v27, %v618_v27 }
   0x5   :  { %v113_v10 = vsel %vm28_vm0, 1.0, %v535_v1  ;;  %v111_v11 = vsel %vm28_vm0, 1.0, %v540_v2  ;;  %v114_v12 = vsel %vm28_vm0, 1.0, %v545_v3  ;;  %v112_v13 = vsel %vm28_vm0, 1.0, %v556_v7  ;;  %v655_v37 = vld [vmem:[%s791_s0 + $0x68] sm:$0xff]  ;;  %v666_v40 = vld [vmem:[%s791_s0 + $0x60] sm:$0xff] }
   0x6   :  { %v399_v16 = vpack.c.bf16 %v114_v12, %v113_v10  ;;  %v394_v17 = vpack.c.bf16 %v112_v13, %v111_v11  ;;  %v116_v18 = vsel %vm28_vm0, 1.0, %v578_v14  ;;  %v115_v19 = vsel %vm28_vm0, 1.0, %v583_v15  ;;  %v671_v41 = vld [vmem:[%s791_s0 + $0x78] sm:$0xff]  ;;  %v685_v44 = vld [vmem:[%s791_s0 + $0x70] sm:$0xff] }
   0x7   :  { %v404_v23 = vpack.c.bf16 %v116_v18, %v115_v19  ;;  %v118_v24 = vsel %vm28_vm0, 1.0, %v594_v20  ;;  %v117_v25 = vsel %vm28_vm0, 1.0, %v599_v21  ;;  %v120_v26 = vsel %vm28_vm0, 1.0, %v604_v22 }
   0x8   :  { %471 = vst [vmem:[%s792_s2 + $0x8] sm:$0xff] %v399_v16   ;;  %51 = vadd.xlane.f32.xlu1 %v32_v8  ;;  %395 = vst [vmem:[%s792_s2] sm:$0xff] %v394_v17   ;;  %47 = vadd.xlane.f32.xlu0 %v30_v9  ;;  %v409_v30 = vpack.c.bf16 %v118_v24, %v117_v25  ;;  %v119_v31 = vsel %vm28_vm0, 1.0, %v618_v27  ;;  %v122_v35 = vsel %vm28_vm0, 1.0, %v636_v32  ;;  %v121_v36 = vsel %vm28_vm0, 1.0, %v641_v33 }
   0x9   :  { %472 = vst [vmem:[%s792_s2 + $0x10] sm:$0xff] %v404_v23   ;;  %v414_v34 = vpack.c.bf16 %v120_v26, %v119_v31  ;;  %v419_v38 = vpack.c.bf16 %v122_v35, %v121_v36  ;;  %v124_v39 = vsel %vm28_vm0, 1.0, %v655_v37  ;;  %v123_v42 = vsel %vm28_vm0, 1.0, %v666_v40 }
   0xa   :  { %473 = vst [vmem:[%s792_s2 + $0x18] sm:$0xff] %v409_v30   ;;  %v126_v43 = vsel %vm28_vm0, 1.0, %v671_v41  ;;  %v424_v47 = vpack.c.bf16 %v124_v39, %v123_v42  ;;  %v125_v48 = vsel %vm28_vm0, 1.0, %v685_v44  ;;  %v38_v50 = vmul.f32 %v604_v22, %v604_v22 }
   0xb   :  { %474 = vst [vmem:[%s792_s2 + $0x20] sm:$0xff] %v414_v34   ;;  %475 = vst [vmem:[%s792_s2 + $0x28] sm:$0xff] %v419_v38   ;;  %v429_v49 = vpack.c.bf16 %v126_v43, %v125_v48  ;;  %v40_v52 = vmul.f32 %v636_v32, %v636_v32  ;;  %v39_v53 = vmul.f32 %v641_v33, %v641_v33 }
   0xc   :  { %55 = vadd.xlane.f32.xlu1 %v34_v28  ;;  %53 = vadd.xlane.f32.xlu0 %v33_v29  ;;  %476 = vst [vmem:[%s792_s2 + $0x30] sm:$0xff] %v424_v47   ;;  %v42_v54 = vmul.f32 %v655_v37, %v655_v37  ;;  %v41_v55 = vmul.f32 %v666_v40, %v666_v40 }
   0xd   :  { %477 = vst [vmem:[%s792_s2 + $0x38] sm:$0xff] %v429_v49   ;;  %v44_v56 = vmul.f32 %v671_v41, %v671_v41  ;;  %v43_v57 = vmul.f32 %v685_v44, %v685_v44 }
  0x10   :  { %59 = vadd.xlane.f32.xlu1 %v36_v45  ;;  %57 = vadd.xlane.f32.xlu0 %v35_v46 }
  0x14   :  { %63 = vadd.xlane.f32.xlu1 %v38_v50  ;;  %61 = vadd.xlane.f32.xlu0 %v37_v51 }
  0x18   :  { %67 = vadd.xlane.f32.xlu1 %v40_v52  ;;  %65 = vadd.xlane.f32.xlu0 %v39_v53 }
  0x1c   :  { %71 = vadd.xlane.f32.xlu1 %v42_v54  ;;  %69 = vadd.xlane.f32.xlu0 %v41_v55 }
  0x20   :  { %75 = vadd.xlane.f32.xlu1 %v44_v56  ;;  %73 = vadd.xlane.f32.xlu0 %v43_v57 }
  0x91   :  { %v50_v58 = vpop.xlane.xlu1 %49  ;;  %v46_v59 = vpop.xlane.xlu0 %45 }
  0x92   :  { %v79_v60 = vmax.f32 %v50_v58, 1e-24  ;;  %v77_v61 = vmax.f32 %v46_v59, 1e-24 }
  0x94   :  { %485 = vrsqrt.f32 %v79_v60 }
  0x95   :  { %487 = vrsqrt.f32 %v77_v61  ;;  %v52_v62 = vpop.xlane.xlu1 %51  ;;  %v48_v63 = vpop.xlane.xlu0 %47 }
  0x96   :  { %v80_v0 = vmax.f32 %v52_v62, 1e-24  ;;  %v78_v5 = vmax.f32 %v48_v63, 1e-24 }
  0x98   :  { %489 = vrsqrt.f32 %v80_v0 }
  0x99   :  { %491 = vrsqrt.f32 %v78_v5  ;;  %v56_v6 = vpop.xlane.xlu1 %55  ;;  %v54_v8 = vpop.xlane.xlu0 %53 }
  0x9a   :  { %v82_v9 = vmax.f32 %v56_v6, 1e-24  ;;  %v81_v10 = vmax.f32 %v54_v8, 1e-24 }
  0x9c   :  { %493 = vrsqrt.f32 %v82_v9 }
  0x9d   :  { %495 = vrsqrt.f32 %v81_v10  ;;  %v60_v11 = vpop.xlane.xlu1 %59  ;;  %v58_v12 = vpop.xlane.xlu0 %57 }
  0x9e   :  { %v486_v13 = vpop.eup %485  ;;  %v84_v16 = vmax.f32 %v60_v11, 1e-24  ;;  %v83_v17 = vmax.f32 %v58_v12, 1e-24 }
  0x9f   :  { %v488_v18 = vpop.eup %487  ;;  %v209_v19 = vmul.f32 %v486_v13, %v535_v1 }
  0xa0   :  { %497 = vrsqrt.f32 %v84_v16  ;;  %v207_v23 = vmul.f32 %v488_v18, %v540_v2 }
  0xa1   :  { %499 = vrsqrt.f32 %v83_v17  ;;  %v64_v24 = vpop.xlane.xlu1 %63  ;;  %v62_v25 = vpop.xlane.xlu0 %61  ;;  %v225_v35 = vsel %vm28_vm0, 1.0, %v209_v19 }
  0xa2   :  { %v490_v26 = vpop.eup %489  ;;  %v86_v28 = vmax.f32 %v64_v24, 1e-24  ;;  %v85_v29 = vmax.f32 %v62_v25, 1e-24  ;;  %v223_v1 = vsel %vm28_vm0, 1.0, %v207_v23 }
  0xa3   :  { %v492_v30 = vpop.eup %491  ;;  %v210_v31 = vmul.f32 %v490_v26, %v545_v3 }
  0xa4   :  { %v208_v34 = vmul.f32 %v492_v30, %v556_v7  ;;  %501 = vrsqrt.f32 %v86_v28 }
  0xa5   :  { %v226_v2 = vsel %vm28_vm0, 1.0, %v210_v31  ;;  %503 = vrsqrt.f32 %v85_v29  ;;  %v68_v36 = vpop.xlane.xlu1 %67  ;;  %v66_v38 = vpop.xlane.xlu0 %65 }
  0xa6   :  { %v494_v39 = vpop.eup %493  ;;  %v439_v42 = vpack.c.bf16 %v226_v2, %v225_v35  ;;  %v224_v3 = vsel %vm28_vm0, 1.0, %v208_v34  ;;  %v88_v43 = vmax.f32 %v68_v36, 1e-24  ;;  %v87_v7 = vmax.f32 %v66_v38, 1e-24 }
  0xa7   :  { %v496_v45 = vpop.eup %495  ;;  %v434_v46 = vpack.c.bf16 %v224_v3, %v223_v1  ;;  %v212_v47 = vmul.f32 %v494_v39, %v578_v14 }
  0xa8   :  { %478 = vst [vmem:[%s793_s1 + $0x8] sm:$0xff] %v439_v42   ;;  %v211_v48 = vmul.f32 %v496_v45, %v583_v15  ;;  %505 = vrsqrt.f32 %v88_v43 }
  0xa9   :  { %435 = vst [vmem:[%s793_s1] sm:$0xff] %v434_v46   ;;  %v228_v49 = vsel %vm28_vm0, 1.0, %v212_v47  ;;  %507 = vrsqrt.f32 %v87_v7  ;;  %v72_v50 = vpop.xlane.xlu1 %71  ;;  %v70_v51 = vpop.xlane.xlu0 %69 }
  0xaa   :  { %v498_v52 = vpop.eup %497  ;;  %v227_v14 = vsel %vm28_vm0, 1.0, %v211_v48  ;;  %v90_v53 = vmax.f32 %v72_v50, 1e-24  ;;  %v89_v54 = vmax.f32 %v70_v51, 1e-24 }
  0xab   :  { %v500_v55 = vpop.eup %499  ;;  %v444_v56 = vpack.c.bf16 %v228_v49, %v227_v14  ;;  %v214_v15 = vmul.f32 %v498_v52, %v594_v20 }
  0xac   :  { %v213_v57 = vmul.f32 %v500_v55, %v599_v21  ;;  %509 = vrsqrt.f32 %v90_v53 }
  0xad   :  { %479 = vst [vmem:[%s793_s1 + $0x10] sm:$0xff] %v444_v56   ;;  %v230_v58 = vsel %vm28_vm0, 1.0, %v214_v15  ;;  %511 = vrsqrt.f32 %v89_v54  ;;  %v76_v59 = vpop.xlane.xlu1 %75  ;;  %v74_v60 = vpop.xlane.xlu0 %73 }
  0xae   :  { %v502_v61 = vpop.eup %501  ;;  %v229_v62 = vsel %vm28_vm0, 1.0, %v213_v57  ;;  %v92_v63 = vmax.f32 %v76_v59, 1e-24  ;;  %v91_v0 = vmax.f32 %v74_v60, 1e-24 }
  0xaf   :  { %v504_v20 = vpop.eup %503  ;;  %v449_v5 = vpack.c.bf16 %v230_v58, %v229_v62  ;;  %v216_v21 = vmul.f32 %v502_v61, %v604_v22 }
  0xb0   :  { %v215_v6 = vmul.f32 %v504_v20, %v618_v27  ;;  %513 = vrsqrt.f32 %v92_v63 }
  0xb1   :  { %480 = vst [vmem:[%s793_s1 + $0x18] sm:$0xff] %v449_v5   ;;  %v232_v8 = vsel %vm28_vm0, 1.0, %v216_v21  ;;  %515 = vrsqrt.f32 %v91_v0 }
  0xb2   :  { %v506_v9 = vpop.eup %505  ;;  %v231_v10 = vsel %vm28_vm0, 1.0, %v215_v6 }
  0xb3   :  { %v508_v11 = vpop.eup %507  ;;  %v454_v12 = vpack.c.bf16 %v232_v8, %v231_v10  ;;  %v218_v13 = vmul.f32 %v506_v9, %v636_v32 }
  0xb4   :  { %v217_v22 = vmul.f32 %v508_v11, %v641_v33 }
  0xb5   :  { %481 = vst [vmem:[%s793_s1 + $0x20] sm:$0xff] %v454_v12   ;;  %v234_v27 = vsel %vm28_vm0, 1.0, %v218_v13 }
  0xb6   :  { %v510_v16 = vpop.eup %509  ;;  %v233_v17 = vsel %vm28_vm0, 1.0, %v217_v22 }
  0xb7   :  { %v512_v18 = vpop.eup %511  ;;  %v459_v19 = vpack.c.bf16 %v234_v27, %v233_v17  ;;  %v220_v23 = vmul.f32 %v510_v16, %v655_v37 }
  0xb8   :  { %v219_v24 = vmul.f32 %v512_v18, %v666_v40 }
  0xb9   :  { %482 = vst [vmem:[%s793_s1 + $0x28] sm:$0xff] %v459_v19   ;;  %v236_v32 = vsel %vm28_vm0, 1.0, %v220_v23 }
  0xba   :  { %v514_v33 = vpop.eup %513  ;;  %v235_v25 = vsel %vm28_vm0, 1.0, %v219_v24 }
  0xbb   :  { %v516_v26 = vpop.eup %515  ;;  %v464_v28 = vpack.c.bf16 %v236_v32, %v235_v25  ;;  %v222_v29 = vmul.f32 %v514_v33, %v671_v41 }
  0xbc   :  { %v221_v30 = vmul.f32 %v516_v26, %v685_v44 }
  0xbd   :  { %483 = vst [vmem:[%s793_s1 + $0x30] sm:$0xff] %v464_v28   ;;  %v238_v37 = vsel %vm28_vm0, 1.0, %v222_v29 }
  0xbe   :  { %v237_v40 = vsel %vm28_vm0, 1.0, %v221_v30 }
  0xbf   :  { %v469_v31 = vpack.c.bf16 %v238_v37, %v237_v40 }
  0xc1   :  { %484 = vst [vmem:[%s793_s1 + $0x38] sm:$0xff] %v469_v31  }

// kernel: agnn_conv_op.9
= control target key start
LH: loop header
LB: loop body
LE: loop exit
PB: predicated region body
PF: predicated region fallthrough
CT: control target
= control target key end

     0   :  { %v48_v1 = vlaneseq  ;;  %s2211_s0 = inlined_call_operand.vmem [shape: s8[128,128], index: 0, kind: input, shape index: {}]   ;;  %s2212_s1 = inlined_call_operand.vmem [shape: bf16[128,128], index: 1, kind: input, shape index: {}]   ;;  %s2213_s2 = inlined_call_operand.vmem [shape: bf16[128,128], index: 2, kind: input, shape index: {}]   ;;  %s2214_s3 = inlined_call_operand.vmem [shape: bf16[1,128], index: 3, kind: input, shape index: {}]   ;;  %s2215_s4 = inlined_call_operand.hbm [shape: bf16[128,128], index: 4, kind: output, shape index: {0}]   ;;  %s2216_s5 = inlined_call_operand.vmem [shape: bf16[128,128], index: 5, kind: output, shape index: {1}]  }
   0x1   :  { %v1442_v0 = vld [vmem:[%s2212_s1] sm:$0xff]   ;;  %v1443_v2 = vld [vmem:[%s2212_s1 + $0x8] sm:$0xff]   ;;  %v1444_v5 = vld [vmem:[%s2212_s1 + $0x10] sm:$0xff]  }
   0x2   :  { %1371 = vmatprep.subr.bf16.mxu0 %v1442_v0  ;;  %v49_v3 = vshrl.u32 %v48_v1, 7  ;;  %v44_v6 = vld [vmem:[%s2214_s3] sm:$0x1]  ;;  %v29_v10 = vld [vmem:[%s2212_s1 + $0x4] sm:$0xf]  ;;  %v1445_v12 = vld [vmem:[%s2212_s1 + $0x18] sm:$0xff]  }
   0x3   :  { %1372 = vmatpush3.bf16.xpose.msra.mxu0 %v1442_v0  ;;  %v46_v7 = vpack.i.b16 %v44_v6, %v44_v6  ;;  %v28_v9 = vld [vmem:[%s2212_s1] sm:$0xf]  ;;  %v1451_v16 = vld [vmem:[%s2213_s2 + $0x8] sm:$0xff]   ;;  %v1452_v17 = vld [vmem:[%s2213_s2 + $0x10] sm:$0xff]  }
   0x4   :  { %1373 = vmatprep.subr.bf16.mxu0 %v1443_v2  ;;  %v50_v4 = vsub.s32 0, %v49_v3  ;;  %v1450_v13 = vld [vmem:[%s2213_s2] sm:$0xff]  }
   0x5   :  { %1403 = vmatprep.subr.bf16.mxu1 %v1450_v13 }
   0x6   :  { %v51_v8 = vrot.slane %v46_v7, %v50_v4  ;;  %1404 = vmatpush3.bf16.msra.mxu1 %v1450_v13 }
   0x7   :  { %1405 = vmatprep.subr.bf16.mxu1 %v1451_v16 }
   0x8   :  { %v1632_v11 = vcombine.low %v51_v8, %v51_v8 }
   0xa   :  { %v56_v14 = vmul.bf16 %v1632_v11, %v28_v9  ;;  %v57_v15 = vmul.bf16 %v1632_v11, %v29_v10 }
   0xb   :  { %1374 = vmatpush3.bf16.xpose.msra.mxu0 %v1443_v2 }
   0xc   :  { %1375 = vmatprep.subr.bf16.mxu0 %v1444_v5  ;;  %v1133_v18 = vcombine.low %v56_v14, %v57_v15 }
   0xe   :  { %1387 = vmatprep.mubr.bf16.mxu0 %v1133_v18 }
  0x13   :  { %1376 = vmatpush3.bf16.xpose.msra.mxu0 %v1444_v5 }
  0x14   :  { %1377 = vmatprep.subr.bf16.mxu0 %v1445_v12 }
  0x15   :  { %11 = vsyncpa [#allocation3], 0  ;;  %1406 = vmatpush3.bf16.msra.mxu1 %v1451_v16  ;;  %v1446_v19 = vld [vmem:[%s2212_s1 + $0x20] sm:$0xff]   ;;  %v1447_v20 = vld [vmem:[%s2212_s1 + $0x28] sm:$0xff]   ;;  %v1578_v0 = vmov 0  }
  0x16   :  { %1407 = vmatprep.subr.bf16.mxu1 %v1452_v17  ;;  %v1448_v21 = vld [vmem:[%s2212_s1 + $0x30] sm:$0xff]   ;;  %v1449_v22 = vld [vmem:[%s2212_s1 + $0x38] sm:$0xff]   ;;  %v30_v23 = vld [vmem:[%s2212_s1 + $0x8] sm:$0xf] }
  0x17   :  { %v31_v24 = vld [vmem:[%s2212_s1 + $0xc] sm:$0xf]  ;;  %v32_v25 = vld [vmem:[%s2212_s1 + $0x10] sm:$0xf]  ;;  %v33_v26 = vld [vmem:[%s2212_s1 + $0x14] sm:$0xf]  ;;  %v58_v27 = vmul.bf16 %v1632_v11, %v30_v23 }
  0x18   :  { %v59_v28 = vmul.bf16 %v1632_v11, %v31_v24  ;;  %v60_v29 = vmul.bf16 %v1632_v11, %v32_v25  ;;  %v61_v30 = vmul.bf16 %v1632_v11, %v33_v26  ;;  %v34_v33 = vld [vmem:[%s2212_s1 + $0x18] sm:$0xf]  ;;  %v35_v34 = vld [vmem:[%s2212_s1 + $0x1c] sm:$0xf]  ;;  %v36_v35 = vld [vmem:[%s2212_s1 + $0x20] sm:$0xf] }
  0x19   :  { %1408 = vmatpush3.bf16.msra.mxu1 %v1452_v17  ;;  %v37_v36 = vld [vmem:[%s2212_s1 + $0x24] sm:$0xf]  ;;  %v62_v37 = vmul.bf16 %v1632_v11, %v34_v33  ;;  %v63_v38 = vmul.bf16 %v1632_v11, %v35_v34  ;;  %v64_v39 = vmul.bf16 %v1632_v11, %v36_v35  ;;  %v38_v43 = vld [vmem:[%s2212_s1 + $0x28] sm:$0xf]  ;;  %v39_v44 = vld [vmem:[%s2212_s1 + $0x2c] sm:$0xf] }
  0x1a   :  { %v1134_v31 = vcombine.low %v58_v27, %v59_v28  ;;  %v1135_v32 = vcombine.low %v60_v29, %v61_v30  ;;  %v65_v40 = vmul.bf16 %v1632_v11, %v37_v36  ;;  %v40_v45 = vld [vmem:[%s2212_s1 + $0x30] sm:$0xf]  ;;  %v41_v46 = vld [vmem:[%s2212_s1 + $0x34] sm:$0xf]  ;;  %v66_v47 = vmul.bf16 %v1632_v11, %v38_v43  ;;  %v42_v53 = vld [vmem:[%s2212_s1 + $0x38] sm:$0xf] }
  0x1b   :  { %1378 = vmatpush3.bf16.xpose.msra.mxu0 %v1445_v12  ;;  %v1136_v41 = vcombine.low %v62_v37, %v63_v38  ;;  %v67_v48 = vmul.bf16 %v1632_v11, %v39_v44  ;;  %v68_v49 = vmul.bf16 %v1632_v11, %v40_v45  ;;  %v69_v50 = vmul.bf16 %v1632_v11, %v41_v46  ;;  %v43_v54 = vld [vmem:[%s2212_s1 + $0x3c] sm:$0xf]  ;;  %v1454_v59 = vld [vmem:[%s2213_s2 + $0x20] sm:$0xff]   ;;  %v1455_v60 = vld [vmem:[%s2213_s2 + $0x28] sm:$0xff]  }
  0x1c   :  { %1379 = vmatprep.subr.bf16.mxu0 %v1446_v19  ;;  %v1137_v42 = vcombine.low %v64_v39, %v65_v40  ;;  %v70_v55 = vmul.bf16 %v1632_v11, %v42_v53  ;;  %v71_v56 = vmul.bf16 %v1632_v11, %v43_v54  ;;  %v1453_v58 = vld [vmem:[%s2213_s2 + $0x18] sm:$0xff]   ;;  %v1456_v61 = vld [vmem:[%s2213_s2 + $0x30] sm:$0xff]   ;;  %v281_v63 = vld [vmem:[%s2211_s0] sm:$0xff] }
  0x1d   :  { %v1138_v51 = vcombine.low %v66_v47, %v67_v48  ;;  %v1139_v52 = vcombine.low %v68_v49, %v69_v50  ;;  %1409 = vmatprep.subr.bf16.mxu1 %v1453_v58  ;;  %v1457_v62 = vld [vmem:[%s2213_s2 + $0x38] sm:$0xff]   ;;  %vm285_vm0 = vnez %v281_v63  ;;  %v282_v5 = vld [vmem:[%s2211_s0 + $0x8] sm:$0xff] }
  0x1e   :  { %v1140_v57 = vcombine.low %v70_v55, %v71_v56  ;;  %1410 = vmatpush3.bf16.msra.mxu1 %v1453_v58  ;;  %v321_v2 = vsel %vm285_vm0, 16843009, %v1578_v0  ;;  %vm286_vm1 = vnez %v282_v5 }
  0x1f   :  { %1411 = vmatprep.subr.bf16.mxu1 %v1454_v59  ;;  %v325_v3 = vunpack.c.0.s8 %v321_v2  ;;  %v326_v4 = vunpack.c.1.s8 %v321_v2  ;;  %v327_v6 = vunpack.c.2.s8 %v321_v2  ;;  %v328_v7 = vunpack.c.3.s8 %v321_v2 }
  0x20   :  { %v322_v11 = vsel %vm286_vm1, 16843009, %v1578_v0 }
  0x21   :  { %v341_v8 = vpack.c.b16 %v325_v3, %v325_v3  ;;  %v343_v9 = vpack.c.b16 %v326_v4, %v326_v4  ;;  %v345_v10 = vpack.c.b16 %v327_v6, %v327_v6  ;;  %v347_v12 = vpack.c.b16 %v328_v7, %v328_v7 }
  0x22   :  { %1412 = vmatpush3.bf16.msra.mxu1 %v1454_v59  ;;  %v329_v16 = vunpack.c.0.s8 %v322_v11  ;;  %v330_v18 = vunpack.c.1.s8 %v322_v11 }
  0x23   :  { %1380 = vmatpush3.bf16.xpose.msra.mxu0 %v1446_v19  ;;  %1413 = vmatprep.subr.bf16.mxu1 %v1455_v60  ;;  %v342_v13 = vpack.c.b8 %v341_v8, %v341_v8  ;;  %v344_v14 = vpack.c.b8 %v343_v9, %v343_v9  ;;  %v346_v15 = vpack.c.b8 %v345_v10, %v345_v10  ;;  %v331_v19 = vunpack.c.2.s8 %v322_v11 }
  0x24   :  { %1381 = vmatprep.subr.bf16.mxu0 %v1447_v20  ;;  %v348_v17 = vpack.c.b8 %v347_v12, %v347_v12  ;;  %v351_v28 = vpack.c.b16 %v330_v18, %v330_v18 }
  0x25   :  { %vm373_vm2 = vnez %v342_v13  ;;  %vm374_vm3 = vnez %v344_v14  ;;  %vm375_vm4 = vnez %v346_v15  ;;  %v353_v29 = vpack.c.b16 %v331_v19, %v331_v19 }
  0x26   :  { %1414 = vmatpush3.bf16.msra.mxu1 %v1455_v60  ;;  %v389_v23 = vsel %vm373_vm2, 16843009, %v1578_v0  ;;  %v390_v24 = vsel %vm374_vm3, 16843009, %v1578_v0  ;;  %vm1744_vm6 = vnez %v348_v17  ;;  %v391_v27 = vsel %vm375_vm4, 16843009, %v1578_v0 }
  0x27   :  { %1415 = vmatprep.subr.bf16.mxu1 %v1456_v61  ;;  %v405_v36 = vunpack.c.0.s8 %v389_v23  ;;  %v406_v37 = vunpack.c.0.s8 %v390_v24  ;;  %v352_v44 = vpack.c.b8 %v351_v28, %v351_v28  ;;  %v354_v45 = vpack.c.b8 %v353_v29, %v353_v29 }
  0x29   :  { %vm1756_vm8 = vcmp.ne.s32.totalorder %v405_v36, 0  ;;  %vm1760_vm9 = vcmp.ne.s32.totalorder %v406_v37, 0  ;;  %vm1768_vm11 = vnez %v352_v44  ;;  %vm1773_vm12 = vnez %v354_v45 }
  0x2a   :  { %1416 = vmatpush3.bf16.msra.mxu1 %v1456_v61  ;;  %v394_v10 = vsel %vm1768_vm11, 16843009, %v1578_v0  ;;  %v395_v12 = vsel %vm1773_vm12, 16843009, %v1578_v0  ;;  %vm1157_vm0 = vmpackc.low %vm1760_vm9, %vm1756_vm8 }
  0x2b   :  { %1382 = vmatpush3.bf16.xpose.msra.mxu0 %v1447_v20  ;;  %1417 = vmatprep.subr.bf16.mxu1 %v1457_v62  ;;  %v283_v20 = vld [vmem:[%s2211_s0 + $0x10] sm:$0xff]  ;;  %v410_v23 = vunpack.c.0.s8 %v394_v10  ;;  %v411_v24 = vunpack.c.0.s8 %v395_v12 }
  0x2c   :  { %1383 = vmatprep.subr.bf16.mxu0 %v1448_v21  ;;  %vm287_vm5 = vnez %v283_v20 }
  0x2d   :  { %v323_v38 = vsel %vm287_vm5, 16843009, %v1578_v0  ;;  %vm1837_vm8 = vcmp.ne.s32.totalorder %v411_v24, 0 }
  0x2e   :  { %1418 = vmatpush3.bf16.msra.mxu1 %v1457_v62  ;;  %v333_v47 = vunpack.c.0.s8 %v323_v38  ;;  %v334_v48 = vunpack.c.1.s8 %v323_v38  ;;  %v335_v49 = vunpack.c.2.s8 %v323_v38  ;;  %v336_v50 = vunpack.c.3.s8 %v323_v38 }
  0x30   :  { %v357_v63 = vpack.c.b16 %v333_v47, %v333_v47  ;;  %v359_v4 = vpack.c.b16 %v334_v48, %v334_v48  ;;  %v361_v5 = vpack.c.b16 %v335_v49, %v335_v49  ;;  %v363_v6 = vpack.c.b16 %v336_v50, %v336_v50 }
  0x32   :  { %v358_v17 = vpack.c.b8 %v357_v63, %v357_v63  ;;  %v360_v19 = vpack.c.b8 %v359_v4, %v359_v4  ;;  %v362_v20 = vpack.c.b8 %v361_v5, %v361_v5 }
  0x33   :  { %1384 = vmatpush3.bf16.xpose.msra.mxu0 %v1448_v21  ;;  %v349_v21 = vpack.c.b16 %v329_v16, %v329_v16 }
  0x34   :  { %1385 = vmatprep.subr.bf16.mxu0 %v1449_v22  ;;  %vm1807_vm3 = vnez %v358_v17  ;;  %vm1811_vm4 = vnez %v360_v19  ;;  %vm1815_vm5 = vnez %v362_v20 }
  0x35   :  { %v397_v53 = vsel %vm1807_vm3, 16843009, %v1578_v0  ;;  %v398_v56 = vsel %vm1811_vm4, 16843009, %v1578_v0 }
  0x36   :  { %v414_v9 = vunpack.c.0.s8 %v398_v56 }
  0x3b   :  { %1386 = vmatpush3.bf16.xpose.msra.mxu0 %v1449_v22  ;;  %v332_v22 = vunpack.c.3.s8 %v322_v11 }
  0x3d   :  { %v355_v33 = vpack.c.b16 %v332_v22, %v332_v22 }
  0x3f   :  { %v356_v46 = vpack.c.b8 %v355_v33, %v355_v33 }
  0x41   :  { %vm1777_vm13 = vnez %v356_v46 }
  0x42   :  { %1388 = vmatmul.mubr.bf16.vlgmr.msra.gmra.mrb[0].mxu0 %v1134_v31  ;;  %v396_v16 = vsel %vm1777_vm13, 16843009, %v1578_v0 }
  0x43   :  { %1391 = vmatprep.mubr.bf16.mxu0 %v1135_v32  ;;  %v350_v32 = vpack.c.b8 %v349_v21, %v349_v21  ;;  %v364_v21 = vpack.c.b8 %v363_v6, %v363_v6 }
  0x45   :  { %vm377_vm7 = vnez %v350_v32 }
  0x46   :  { %v393_v58 = vsel %vm377_vm7, 16843009, %v1578_v0  ;;  %vm1833_vm7 = vcmp.ne.s32.totalorder %v410_v23, 0 }
  0x47   :  { %v409_v15 = vunpack.c.0.s8 %v393_v58 }
  0x49   :  { %vm1803_vm2 = vcmp.ne.s32.totalorder %v409_v15, 0 }
  0x4a   :  { %1392 = vmatmul.mubr.bf16.gmra.mrb[4].mxu0 %v1136_v41  ;;  %v392_v41 = vsel %vm1744_vm6, 16843009, %v1578_v0  ;;  %vm1819_vm6 = vnez %v364_v21 }
  0x4b   :  { %1395 = vmatprep.mubr.bf16.mxu0 %v1137_v42  ;;  %v407_v42 = vunpack.c.0.s8 %v391_v27  ;;  %v408_v54 = vunpack.c.0.s8 %v392_v41  ;;  %v400_v59 = vsel %vm1819_vm6, 16843009, %v1578_v0 }
  0x4d   :  { %vm1764_vm10 = vcmp.ne.s32.totalorder %v407_v42, 0  ;;  %vm1781_vm15 = vcmp.ne.s32.totalorder %v408_v54, 0 }
  0x4e   :  { %vm1160_vm1 = vmpackc.low %vm1781_vm15, %vm1764_vm10 }
  0x4f   :  { %vm1163_vm10 = vmpackc.low %vm1833_vm7, %vm1803_vm2 }
  0x52   :  { %1396 = vmatmul.mubr.bf16.gmra.mrb[8].mxu0 %v1138_v51  ;;  %v284_v51 = vld [vmem:[%s2211_s0 + $0x18] sm:$0xff] }
  0x53   :  { %1399 = vmatprep.mubr.bf16.mxu0 %v1139_v52  ;;  %vm288_vm14 = vnez %v284_v51 }
  0x54   :  { %v324_v13 = vsel %vm288_vm14, 16843009, %v1578_v0 }
  0x55   :  { %v338_v26 = vunpack.c.1.s8 %v324_v13  ;;  %v340_v32 = vunpack.c.3.s8 %v324_v13 }
  0x57   :  { %v367_v46 = vpack.c.b16 %v338_v26, %v338_v26  ;;  %v371_v49 = vpack.c.b16 %v340_v32, %v340_v32 }
  0x59   :  { %v372_v5 = vpack.c.b8 %v371_v49, %v371_v49 }
  0x5a   :  { %1400 = vmatmul.mubr.bf16.gmra.mrb[12].mxu0 %v1140_v57  ;;  %v399_v57 = vsel %vm1815_vm5, 16843009, %v1578_v0 }
  0x5b   :  { %v415_v10 = vunpack.c.0.s8 %v399_v57  ;;  %vm388_vm15 = vnez %v372_v5 }
  0x5d   :  { %vm1878_vm3 = vcmp.ne.s32.totalorder %v415_v10, 0 }
 0x115   :  { %v1389_v25 = vpop.f32.mrb[0].mxu0 }
 0x116   :  { %v293_v30 = vmul.f32 1.442695, %v1389_v25  ;;  %v218_v31 = vpop.f32.mrb[1].mxu0  ;;  %v337_v25 = vunpack.c.0.s8 %v324_v13 }
 0x117   :  { %v289_v34 = vmul.f32 1.442695, %v218_v31  ;;  %v1390_v35 = vpop.f32.mrb[2].mxu0  ;;  %v339_v31 = vunpack.c.2.s8 %v324_v13  ;;  %v416_v13 = vunpack.c.0.s8 %v400_v59 }
 0x118   :  { %1458 = vpow2.f32 %v293_v30  ;;  %v295_v39 = vmul.f32 1.442695, %v1390_v35  ;;  %v221_v40 = vpop.f32.mrb[3].mxu0  ;;  %v412_v30 = vunpack.c.0.s8 %v396_v16  ;;  %v365_v45 = vpack.c.b16 %v337_v25, %v337_v25 }
 0x119   :  { %1460 = vpow2.f32 %v289_v34  ;;  %v291_v43 = vmul.f32 1.442695, %v221_v40  ;;  %v369_v48 = vpack.c.b16 %v339_v31, %v339_v31  ;;  %vm1882_vm2 = vcmp.ne.s32.totalorder %v416_v13, 0 }
 0x11a   :  { %1462 = vpow2.f32 %v295_v39  ;;  %vm1844_vm9 = vcmp.ne.s32.totalorder %v412_v30, 0  ;;  %vm1172_vm5 = vmpackc.low %vm1882_vm2, %vm1878_vm3  ;;  %v1579_v40 = vmov 32  }
 0x11b   :  { %1464 = vpow2.f32 %v291_v43  ;;  %v370_v4 = vpack.c.b8 %v369_v48, %v369_v48  ;;  %vm1166_vm11 = vmpackc.low %vm1844_vm9, %vm1837_vm8  ;;  %1440 = vset.pattern.permute.xlu1 %v1579_v40  ;;  %1441 = vset.pattern.permute.xlu0 %v1579_v40 }
 0x11d   :  { %v1393_v55 = vpop.f32.mrb[4].mxu0  ;;  %vm387_vm14 = vnez %v370_v4 }
 0x11e   :  { %v301_v60 = vmul.f32 1.442695, %v1393_v55  ;;  %v234_v61 = vpop.f32.mrb[5].mxu0  ;;  %v403_v26 = vsel %vm387_vm14, 16843009, %v1578_v0 }
 0x11f   :  { %v297_v2 = vmul.f32 1.442695, %v234_v61  ;;  %v1394_v3 = vpop.f32.mrb[6].mxu0  ;;  %v368_v61 = vpack.c.b8 %v367_v46, %v367_v46 }
 0x120   :  { %1466 = vpow2.f32 %v301_v60  ;;  %v303_v7 = vmul.f32 1.442695, %v1394_v3  ;;  %v237_v8 = vpop.f32.mrb[7].mxu0  ;;  %v366_v60 = vpack.c.b8 %v365_v45, %v365_v45  ;;  %v413_v3 = vunpack.c.0.s8 %v397_v53 }
 0x121   :  { %1468 = vpow2.f32 %v297_v2  ;;  %v299_v11 = vmul.f32 1.442695, %v237_v8  ;;  %vm386_vm13 = vnez %v368_v61 }
 0x122   :  { %v1459_v14 = vpop.eup %1458  ;;  %1470 = vpow2.f32 %v303_v7  ;;  %vm385_vm12 = vnez %v366_v60  ;;  %v402_v24 = vsel %vm386_vm13, 16843009, %v1578_v0 }
 0x123   :  { %v1461_v18 = vpop.eup %1460  ;;  %1472 = vpow2.f32 %v299_v11  ;;  %v401_v23 = vsel %vm385_vm12, 16843009, %v1578_v0  ;;  %v418_v32 = vunpack.c.0.s8 %v402_v24 }
 0x124   :  { %v1463_v22 = vpop.eup %1462  ;;  %v417_v31 = vunpack.c.0.s8 %v401_v23 }
 0x125   :  { %v1465_v27 = vpop.eup %1464  ;;  %v1397_v28 = vpop.f32.mrb[8].mxu0  ;;  %v1161_v29 = vpack.c.bf16 %v1463_v22, %v1459_v14  ;;  %vm434_vm7 = vcmp.ne.s32.totalorder %v418_v32, 0 }
 0x126   :  { %v309_v33 = vmul.f32 1.442695, %v1397_v28  ;;  %v250_v34 = vpop.f32.mrb[9].mxu0  ;;  %v1158_v35 = vpack.c.bf16 %v1465_v27, %v1461_v18  ;;  %v404_v27 = vsel %vm388_vm15, 16843009, %v1578_v0  ;;  %vm433_vm6 = vcmp.ne.s32.totalorder %v417_v31, 0 }
 0x127   :  { %v305_v38 = vmul.f32 1.442695, %v250_v34  ;;  %v1398_v39 = vpop.f32.mrb[10].mxu0  ;;  %v420_v34 = vunpack.c.0.s8 %v404_v27  ;;  %v1963_v27 = vand.u32 127, %v48_v1 }
 0x128   :  { %1474 = vpow2.f32 %v309_v33  ;;  %v311_v43 = vmul.f32 1.442695, %v1398_v39  ;;  %v253_v44 = vpop.f32.mrb[11].mxu0  ;;  %1419 = vmatprep.mubr.msk.bf16.mxu1 %vm1157_vm0, %v1158_v35  ;;  %vm1870_vm0 = vcmp.ne.s32.totalorder %v413_v3, 0  ;;  %v419_v33 = vunpack.c.0.s8 %v403_v26 }
 0x129   :  { %1476 = vpow2.f32 %v305_v38  ;;  %v307_v47 = vmul.f32 1.442695, %v253_v44  ;;  %1420 = vmatmul.mubr.msk.bf16.vlgmr.msra.gmra.mrb[0].mxu1 %vm1160_vm1, %v1161_v29  ;;  %vm1874_vm1 = vcmp.ne.s32.totalorder %v414_v9, 0  ;;  %vm436_vm9 = vcmp.ne.s32.totalorder %v420_v34, 0 }
 0x12a   :  { %v1467_v50 = vpop.eup %1466  ;;  %1478 = vpow2.f32 %v311_v43  ;;  %vm1169_vm4 = vmpackc.low %vm1874_vm1, %vm1870_vm0  ;;  %vm435_vm8 = vcmp.ne.s32.totalorder %v419_v33, 0 }
 0x12b   :  { %v1469_v54 = vpop.eup %1468  ;;  %1480 = vpow2.f32 %v307_v47 }
 0x12c   :  { %v1471_v58 = vpop.eup %1470 }
 0x12d   :  { %v1473_v62 = vpop.eup %1472  ;;  %v1401_v63 = vpop.f32.mrb[12].mxu0  ;;  %v1167_v2 = vpack.c.bf16 %v1471_v58, %v1467_v50 }
 0x12e   :  { %v317_v6 = vmul.f32 1.442695, %v1401_v63  ;;  %v266_v7 = vpop.f32.mrb[13].mxu0  ;;  %v1164_v8 = vpack.c.bf16 %v1473_v62, %v1469_v54 }
 0x12f   :  { %v313_v11 = vmul.f32 1.442695, %v266_v7  ;;  %v1402_v12 = vpop.f32.mrb[14].mxu0 }
 0x130   :  { %1482 = vpow2.f32 %v317_v6  ;;  %v319_v14 = vmul.f32 1.442695, %v1402_v12  ;;  %v269_v15 = vpop.f32.mrb[15].mxu0  ;;  %1423 = vmatprep.mubr.msk.bf16.mxu1 %vm1163_vm10, %v1164_v8  ;;  %vm1175_vm10 = vmpackc.low %vm434_vm7, %vm433_vm6 }
 0x131   :  { %1484 = vpow2.f32 %v313_v11  ;;  %v315_v16 = vmul.f32 1.442695, %v269_v15  ;;  %1424 = vmatmul.mubr.msk.bf16.gmra.mrb[4].mxu1 %vm1166_vm11, %v1167_v2  ;;  %vm1178_vm11 = vmpackc.low %vm436_vm9, %vm435_vm8 }
 0x132   :  { %v1475_v17 = vpop.eup %1474  ;;  %1486 = vpow2.f32 %v319_v14 }
 0x133   :  { %v1477_v21 = vpop.eup %1476  ;;  %1488 = vpow2.f32 %v315_v16 }
 0x134   :  { %v1479_v25 = vpop.eup %1478 }
 0x135   :  { %v1481_v28 = vpop.eup %1480  ;;  %v1173_v29 = vpack.c.bf16 %v1479_v25, %v1475_v17 }
 0x136   :  { %v1170_v30 = vpack.c.bf16 %v1481_v28, %v1477_v21 }
 0x138   :  { %1427 = vmatprep.mubr.msk.bf16.mxu1 %vm1169_vm4, %v1170_v30 }
 0x139   :  { %1428 = vmatmul.mubr.msk.bf16.gmra.mrb[8].mxu1 %vm1172_vm5, %v1173_v29 }
 0x13a   :  { %v1483_v0 = vpop.eup %1482 }
 0x13b   :  { %v1485_v35 = vpop.eup %1484 }
 0x13c   :  { %v1487_v36 = vpop.eup %1486 }
 0x13d   :  { %v1489_v37 = vpop.eup %1488  ;;  %v1179_v38 = vpack.c.bf16 %v1487_v36, %v1483_v0 }
 0x13e   :  { %v1176_v39 = vpack.c.bf16 %v1489_v37, %v1485_v35 }
 0x140   :  { %1431 = vmatprep.mubr.msk.bf16.mxu1 %vm1175_vm10, %v1176_v39 }
 0x141   :  { %1432 = vmatmul.mubr.msk.bf16.gmra.mrb[12].mxu1 %vm1178_vm11, %v1179_v38 }
 0x1fc   :  { %v1898_v41 = vpop.f32.mrb[0].mxu1 }
 0x1fd   :  { %1490 = vrcp.f32 %v1898_v41  ;;  %v1901_v42 = vpop.f32.mrb[1].mxu1  ;;  %vm624_vm12 = vcmp.gt.f32.partialorder %v1898_v41, 0.0 }
 0x1fe   :  { %1492 = vrcp.f32 %v1901_v42  ;;  %v1904_v43 = vpop.f32.mrb[2].mxu1  ;;  %vm622_vm13 = vcmp.gt.f32.partialorder %v1901_v42, 0.0 }
 0x1ff   :  { %1494 = vrcp.f32 %v1904_v43  ;;  %v1907_v44 = vpop.f32.mrb[3].mxu1  ;;  %vm625_vm14 = vcmp.gt.f32.partialorder %v1904_v43, 0.0 }
 0x200   :  { %1496 = vrcp.f32 %v1907_v44  ;;  %vm623_vm15 = vcmp.gt.f32.partialorder %v1907_v44, 0.0 }
 0x204   :  { %v1910_v45 = vpop.f32.mrb[4].mxu1 }
 0x205   :  { %1498 = vrcp.f32 %v1910_v45  ;;  %v1913_v46 = vpop.f32.mrb[5].mxu1  ;;  %vm628_vm0 = vcmp.gt.f32.partialorder %v1910_v45, 0.0 }
 0x206   :  { %v1915_v47 = vpop.f32.mrb[6].mxu1  ;;  %vm626_vm3 = vcmp.gt.f32.partialorder %v1913_v46, 0.0 }
 0x207   :  { %v1491_v48 = vpop.eup %1490  ;;  %1500 = vrcp.f32 %v1915_v47  ;;  %v1918_v49 = vpop.f32.mrb[7].mxu1  ;;  %vm629_vm1 = vcmp.gt.f32.partialorder %v1915_v47, 0.0 }
 0x208   :  { %v1493_v50 = vpop.eup %1492  ;;  %1502 = vrcp.f32 %v1913_v46  ;;  %v672_v51 = vsel %vm624_vm12, %v1491_v48, 0.0  ;;  %vm627_vm2 = vcmp.gt.f32.partialorder %v1918_v49, 0.0  ;;  %vm688_vm12 = vcmp.lt.s32.totalorder %v1963_v27, 32 }
 0x209   :  { %v1495_v52 = vpop.eup %1494  ;;  %1504 = vrcp.f32 %v1918_v49  ;;  %702 = vperm.xlu1 %1440, %v672_v51   ;;  %v670_v53 = vsel %vm622_vm13, %v1493_v50, 0.0  ;;  %vm689_vm13 = vcmp.eq.s32.totalorder %v1963_v27, 32 }
 0x20a   :  { %v1497_v54 = vpop.eup %1496  ;;  %692 = vperm.xlu0 %1441, %v670_v53   ;;  %v673_v56 = vsel %vm625_vm14, %v1495_v52, 0.0 }
 0x20b   :  { %v671_v58 = vsel %vm623_vm15, %v1497_v54, 0.0 }
 0x20c   :  { %v1925_v55 = vpop.f32.mrb[8].mxu1 }
 0x20d   :  { %1506 = vrcp.f32 %v1925_v55  ;;  %707 = vperm.xlu1 %1440, %v673_v56   ;;  %v1929_v57 = vpop.f32.mrb[9].mxu1  ;;  %vm632_vm4 = vcmp.gt.f32.partialorder %v1925_v55, 0.0 }
 0x20e   :  { %697 = vperm.xlu0 %1441, %v671_v58   ;;  %v1931_v59 = vpop.f32.mrb[10].mxu1  ;;  %vm630_vm6 = vcmp.gt.f32.partialorder %v1929_v57, 0.0 }
 0x20f   :  { %v1499_v60 = vpop.eup %1498  ;;  %1508 = vrcp.f32 %v1931_v59  ;;  %v1934_v61 = vpop.f32.mrb[11].mxu1  ;;  %vm633_vm5 = vcmp.gt.f32.partialorder %v1931_v59, 0.0 }
 0x210   :  { %1510 = vrcp.f32 %v1929_v57  ;;  %v676_v62 = vsel %vm628_vm0, %v1499_v60, 0.0  ;;  %vm631_vm7 = vcmp.gt.f32.partialorder %v1934_v61, 0.0 }
 0x211   :  { %v1501_v63 = vpop.eup %1500  ;;  %1512 = vrcp.f32 %v1934_v61 }
 0x212   :  { %v1503_v2 = vpop.eup %1502  ;;  %722 = vperm.xlu0 %1441, %v676_v62   ;;  %v677_v3 = vsel %vm629_vm1, %v1501_v63, 0.0 }
 0x213   :  { %v1505_v4 = vpop.eup %1504  ;;  %727 = vperm.xlu1 %1440, %v677_v3   ;;  %v674_v7 = vsel %vm626_vm3, %v1503_v2, 0.0 }
 0x214   :  { %v1940_v5 = vpop.f32.mrb[12].mxu1  ;;  %v675_v9 = vsel %vm627_vm2, %v1505_v4, 0.0 }
 0x215   :  { %1514 = vrcp.f32 %v1940_v5  ;;  %v1944_v6 = vpop.f32.mrb[13].mxu1  ;;  %vm636_vm8 = vcmp.gt.f32.partialorder %v1940_v5, 0.0 }
 0x216   :  { %712 = vperm.xlu0 %1441, %v674_v7   ;;  %v1947_v8 = vpop.f32.mrb[14].mxu1  ;;  %1516 = vrcp.f32 %v1944_v6  ;;  %vm634_vm10 = vcmp.gt.f32.partialorder %v1944_v6, 0.0 }
 0x217   :  { %v1507_v10 = vpop.eup %1506  ;;  %717 = vperm.xlu1 %1440, %v675_v9   ;;  %v1950_v11 = vpop.f32.mrb[15].mxu1  ;;  %vm637_vm11 = vcmp.gt.f32.partialorder %v1947_v8, 0.0 }
 0x218   :  { %1518 = vrcp.f32 %v1950_v11  ;;  %v680_v12 = vsel %vm632_vm4, %v1507_v10, 0.0  ;;  %vm635_vm9 = vcmp.gt.f32.partialorder %v1950_v11, 0.0 }
 0x219   :  { %v1509_v13 = vpop.eup %1508  ;;  %1520 = vrcp.f32 %v1947_v8 }
 0x21a   :  { %v1511_v14 = vpop.eup %1510  ;;  %742 = vperm.xlu0 %1441, %v680_v12   ;;  %v681_v15 = vsel %vm633_vm5, %v1509_v13, 0.0 }
 0x21b   :  { %v1513_v16 = vpop.eup %1512  ;;  %747 = vperm.xlu1 %1440, %v681_v15   ;;  %v678_v17 = vsel %vm630_vm6, %v1511_v14, 0.0 }
 0x21c   :  { %v679_v18 = vsel %vm631_vm7, %v1513_v16, 0.0 }
 0x21e   :  { %732 = vperm.xlu0 %1441, %v678_v17  }
 0x21f   :  { %v1515_v19 = vpop.eup %1514  ;;  %737 = vperm.xlu1 %1440, %v679_v18  }
 0x220   :  { %v684_v20 = vsel %vm636_vm8, %v1515_v19, 0.0  ;;  %v1517_v21 = vpop.eup %1516 }
 0x221   :  { %v682_v25 = vsel %vm634_vm10, %v1517_v21, 0.0 }
 0x222   :  { %v1519_v22 = vpop.eup %1518  ;;  %762 = vperm.xlu0 %1441, %v684_v20  }
 0x223   :  { %v683_v23 = vsel %vm635_vm9, %v1519_v22, 0.0  ;;  %v1521_v24 = vpop.eup %1520 }
 0x224   :  { %757 = vperm.xlu1 %1440, %v683_v23   ;;  %v685_v26 = vsel %vm637_vm11, %v1521_v24, 0.0 }
 0x226   :  { %752 = vperm.xlu0 %1441, %v682_v25  }
 0x228   :  { %767 = vperm.xlu1 %1440, %v685_v26  }
 0x288   :  { %v703_v28 = vpop.permute.xlu1 %702 }
 0x289   :  { %v772_v29 = vmul.f32 %v1898_v41, %v703_v28  ;;  %v693_v30 = vpop.permute.xlu0 %692 }
 0x28a   :  { %v770_v31 = vmul.f32 %v693_v30, %v1901_v42 }
 0x28b   :  { %v788_v32 = vmax.f32 %v772_v29, 0.0 }
 0x28c   :  { %v786_v33 = vmax.f32 %v770_v31, 0.0  ;;  %v708_v34 = vpop.permute.xlu1 %707 }
 0x28d   :  { %v1970_v0 = vsel %vm688_vm12, %v788_v32, 0.0  ;;  %v773_v35 = vmul.f32 %v1904_v43, %v708_v34  ;;  %v698_v36 = vpop.permute.xlu0 %697 }
 0x28e   :  { %v1976_v1 = vsel %vm688_vm12, %v786_v33, 0.0  ;;  %v771_v37 = vmul.f32 %v698_v36, %v1907_v44  ;;  %v822_v38 = vmul.f32 %v1970_v0, %v1970_v0  ;;  %v904_v41 = vsel %vm689_vm13, 1.0, %v1970_v0 }
 0x28f   :  { %v789_v39 = vmax.f32 %v773_v35, 0.0  ;;  %v902_v42 = vsel %vm689_vm13, 1.0, %v1976_v1  ;;  %v820_v53 = vmul.f32 %v1976_v1, %v1976_v1 }
 0x290   :  { %v787_v40 = vmax.f32 %v771_v37, 0.0  ;;  %840 = vadd.xlane.f32.xlu0 %v822_v38 }
 0x291   :  { %v1989_v43 = vsel %vm688_vm12, %v789_v39, 0.0  ;;  %v723_v48 = vpop.permute.xlu0 %722 }
 0x292   :  { %v905_v44 = vsel %vm689_vm13, 1.0, %v1989_v43  ;;  %v1996_v50 = vsel %vm688_vm12, %v787_v40, 0.0  ;;  %v776_v51 = vmul.f32 %v1910_v45, %v723_v48  ;;  %v728_v52 = vpop.permute.xlu1 %727  ;;  %v823_v7 = vmul.f32 %v1989_v43, %v1989_v43 }
 0x293   :  { %v1253_v54 = vpack.c.bf16 %v905_v44, %v904_v41  ;;  %v903_v56 = vsel %vm689_vm13, 1.0, %v1996_v50  ;;  %v777_v58 = vmul.f32 %v1915_v47, %v728_v52  ;;  %v821_v60 = vmul.f32 %v1996_v50, %v1996_v50 }
 0x294   :  { %v1248_v62 = vpack.c.bf16 %v903_v56, %v902_v42  ;;  %v792_v63 = vmax.f32 %v776_v51, 0.0  ;;  %836 = vadd.xlane.f32.xlu0 %v820_v53 }
 0x295   :  { %1325 = vst [vmem:[%s2216_s5 + $0x8] sm:$0xff] %v1253_v54   ;;  %v793_v45 = vmax.f32 %v777_v58, 0.0  ;;  %v713_v2 = vpop.permute.xlu0 %712  ;;  %838 = vadd.xlane.f32.xlu1 %v821_v60 }
 0x296   :  { %1249 = vst [vmem:[%s2216_s5] sm:$0xff] %v1248_v62   ;;  %v2015_v47 = vsel %vm688_vm12, %v792_v63, 0.0  ;;  %v774_v3 = vmul.f32 %v713_v2, %v1913_v46  ;;  %v718_v4 = vpop.permute.xlu1 %717 }
 0x297   :  { %v908_v9 = vsel %vm689_vm13, 1.0, %v2015_v47  ;;  %v2025_v10 = vsel %vm688_vm12, %v793_v45, 0.0  ;;  %v775_v12 = vmul.f32 %v718_v4, %v1918_v49  ;;  %v826_v13 = vmul.f32 %v2015_v47, %v2015_v47 }
 0x298   :  { %v909_v46 = vsel %vm689_vm13, 1.0, %v2025_v10  ;;  %v790_v14 = vmax.f32 %v774_v3, 0.0  ;;  %842 = vadd.xlane.f32.xlu0 %v823_v7  ;;  %v827_v20 = vmul.f32 %v2025_v10, %v2025_v10 }
 0x299   :  { %v1263_v15 = vpack.c.bf16 %v909_v46, %v908_v9  ;;  %v791_v16 = vmax.f32 %v775_v12, 0.0  ;;  %v743_v17 = vpop.permute.xlu0 %742  ;;  %848 = vadd.xlane.f32.xlu1 %v826_v13 }
 0x29a   :  { %v2035_v18 = vsel %vm688_vm12, %v790_v14, 0.0  ;;  %v780_v19 = vmul.f32 %v1925_v55, %v743_v17  ;;  %v748_v49 = vpop.permute.xlu1 %747 }
 0x29b   :  { %1327 = vst [vmem:[%s2216_s5 + $0x18] sm:$0xff] %v1263_v15   ;;  %v906_v21 = vsel %vm689_vm13, 1.0, %v2035_v18  ;;  %v2048_v22 = vsel %vm688_vm12, %v791_v16, 0.0  ;;  %v781_v23 = vmul.f32 %v1931_v59, %v748_v49  ;;  %v824_v55 = vmul.f32 %v2035_v18, %v2035_v18 }
 0x29c   :  { %v907_v24 = vsel %vm689_vm13, 1.0, %v2048_v22  ;;  %v796_v25 = vmax.f32 %v780_v19, 0.0  ;;  %850 = vadd.xlane.f32.xlu0 %v827_v20  ;;  %v825_v32 = vmul.f32 %v2048_v22, %v2048_v22 }
 0x29d   :  { %v1258_v26 = vpack.c.bf16 %v907_v24, %v906_v21  ;;  %v797_v28 = vmax.f32 %v781_v23, 0.0  ;;  %v733_v29 = vpop.permute.xlu0 %732  ;;  %844 = vadd.xlane.f32.xlu1 %v824_v55 }
 0x29e   :  { %v2058_v30 = vsel %vm688_vm12, %v796_v25, 0.0  ;;  %v778_v31 = vmul.f32 %v733_v29, %v1929_v57  ;;  %v738_v59 = vpop.permute.xlu1 %737 }
 0x29f   :  { %1326 = vst [vmem:[%s2216_s5 + $0x10] sm:$0xff] %v1258_v26   ;;  %v912_v33 = vsel %vm689_vm13, 1.0, %v2058_v30  ;;  %v2071_v34 = vsel %vm688_vm12, %v797_v28, 0.0  ;;  %v779_v35 = vmul.f32 %v738_v59, %v1934_v61  ;;  %v830_v57 = vmul.f32 %v2058_v30, %v2058_v30 }
 0x2a0   :  { %v913_v36 = vsel %vm689_vm13, 1.0, %v2071_v34  ;;  %v794_v37 = vmax.f32 %v778_v31, 0.0  ;;  %846 = vadd.xlane.f32.xlu0 %v825_v32  ;;  %v831_v61 = vmul.f32 %v2071_v34, %v2071_v34 }
 0x2a1   :  { %v1273_v38 = vpack.c.bf16 %v913_v36, %v912_v33  ;;  %v795_v39 = vmax.f32 %v779_v35, 0.0  ;;  %v763_v40 = vpop.permute.xlu0 %762  ;;  %856 = vadd.xlane.f32.xlu1 %v830_v57 }
 0x2a2   :  { %v2081_v41 = vsel %vm688_vm12, %v794_v37, 0.0  ;;  %v784_v42 = vmul.f32 %v1940_v5, %v763_v40 }
 0x2a3   :  { %1329 = vst [vmem:[%s2216_s5 + $0x28] sm:$0xff] %v1273_v38   ;;  %v910_v48 = vsel %vm689_vm13, 1.0, %v2081_v41  ;;  %v2094_v44 = vsel %vm688_vm12, %v795_v39, 0.0  ;;  %v758_v51 = vpop.permute.xlu1 %757  ;;  %v828_v52 = vmul.f32 %v2081_v41, %v2081_v41 }
 0x2a4   :  { %v911_v5 = vsel %vm689_vm13, 1.0, %v2094_v44  ;;  %v783_v53 = vmul.f32 %v758_v51, %v1950_v11  ;;  %858 = vadd.xlane.f32.xlu0 %v831_v61  ;;  %v800_v58 = vmax.f32 %v784_v42, 0.0  ;;  %v829_v63 = vmul.f32 %v2094_v44, %v2094_v44 }
 0x2a5   :  { %v1268_v54 = vpack.c.bf16 %v911_v5, %v910_v48  ;;  %v753_v56 = vpop.permute.xlu0 %752  ;;  %852 = vadd.xlane.f32.xlu1 %v828_v52 }
 0x2a6   :  { %v799_v60 = vmax.f32 %v783_v53, 0.0  ;;  %v782_v62 = vmul.f32 %v753_v56, %v1944_v6  ;;  %v2117_v6 = vsel %vm688_vm12, %v800_v58, 0.0 }
 0x2a7   :  { %1328 = vst [vmem:[%s2216_s5 + $0x20] sm:$0xff] %v1268_v54   ;;  %v768_v45 = vpop.permute.xlu1 %767  ;;  %v916_v15 = vsel %vm689_vm13, 1.0, %v2117_v6  ;;  %v834_v49 = vmul.f32 %v2117_v6, %v2117_v6 }
 0x2a8   :  { %v2110_v2 = vsel %vm688_vm12, %v799_v60, 0.0  ;;  %v798_v11 = vmax.f32 %v782_v62, 0.0  ;;  %v785_v3 = vmul.f32 %v1947_v8, %v768_v45  ;;  %854 = vadd.xlane.f32.xlu0 %v829_v63 }
 0x2a9   :  { %v833_v4 = vmul.f32 %v2110_v2, %v2110_v2  ;;  %v915_v12 = vsel %vm689_vm13, 1.0, %v2110_v2 }
 0x2aa   :  { %v2121_v7 = vsel %vm688_vm12, %v798_v11, 0.0  ;;  %v801_v9 = vmax.f32 %v785_v3, 0.0 }
 0x2ab   :  { %v914_v8 = vsel %vm689_vm13, 1.0, %v2121_v7  ;;  %v832_v13 = vmul.f32 %v2121_v7, %v2121_v7 }
 0x2ac   :  { %v1278_v46 = vpack.c.bf16 %v915_v12, %v914_v8  ;;  %v2133_v14 = vsel %vm688_vm12, %v801_v9, 0.0  ;;  %862 = vadd.xlane.f32.xlu0 %v833_v4 }
 0x2ad   :  { %v917_v16 = vsel %vm689_vm13, 1.0, %v2133_v14  ;;  %860 = vadd.xlane.f32.xlu1 %v832_v13  ;;  %v835_v17 = vmul.f32 %v2133_v14, %v2133_v14 }
 0x2ae   :  { %1330 = vst [vmem:[%s2216_s5 + $0x30] sm:$0xff] %v1278_v46   ;;  %v1283_v19 = vpack.c.bf16 %v917_v16, %v916_v15 }
 0x2b0   :  { %1331 = vst [vmem:[%s2216_s5 + $0x38] sm:$0xff] %v1283_v19   ;;  %866 = vadd.xlane.f32.xlu0 %v835_v17  ;;  %s1580_s5 = smov [#allocation2]  }
 0x2b1   :  { %864 = vadd.xlane.f32.xlu1 %v834_v49  ;;  %s1115_s26 = sshll.u32 %s1580_s5, 4  ;;  %s1116_s26 = int_to_ptr.vmem [resolvable:$true] %s1115_s26 }
 0x2b2   :  { %s1554_s27 = scalar_lea.vmem %s1116_s26, 1024  ;;  %p1559_p1 = scmp.lt.s32.totalorder %s1116_s26, %s1116_s26 }
 0x2b3   :  { %p1555_p0 = scmp.ne.s32.totalorder %s1116_s26, %s1554_s27  ;;  %p1560_p2 = scmp.lt.s32.totalorder %s1554_s27, %s1554_s27 }
 0x2b5   :  { %p1561_p3 = por %p1560_p2, %p1559_p1 }
 0x2b7   :  { %p1562_p4 = pnand %p1561_p3, %p1555_p0 }
 0x31d   :  { %v841_v20 = vpop.xlane.xlu0 %840 }
 0x31e   :  { %v870_v21 = vmax.f32 %v841_v20, 1e-24 }
 0x320   :  { %1522 = vrsqrt.f32 %v870_v21 }
 0x321   :  { %v837_v23 = vpop.xlane.xlu0 %836 }
 0x322   :  { %v868_v55 = vmax.f32 %v837_v23, 1e-24  ;;  %v839_v24 = vpop.xlane.xlu1 %838 }
 0x323   :  { %v869_v25 = vmax.f32 %v839_v24, 1e-24 }
 0x324   :  { %1524 = vrsqrt.f32 %v868_v55 }
 0x325   :  { %1526 = vrsqrt.f32 %v869_v25  ;;  %v843_v26 = vpop.xlane.xlu0 %842 }
 0x326   :  { %v871_v28 = vmax.f32 %v843_v26, 1e-24  ;;  %v849_v29 = vpop.xlane.xlu1 %848 }
 0x327   :  { %v874_v31 = vmax.f32 %v849_v29, 1e-24 }
 0x328   :  { %1528 = vrsqrt.f32 %v871_v28 }
 0x329   :  { %1530 = vrsqrt.f32 %v874_v31  ;;  %v851_v59 = vpop.xlane.xlu0 %850 }
 0x32a   :  { %v875_v32 = vmax.f32 %v851_v59, 1e-24  ;;  %v845_v33 = vpop.xlane.xlu1 %844  ;;  %v1523_v57 = vpop.eup %1522 }
 0x32b   :  { %v872_v35 = vmax.f32 %v845_v33, 1e-24  ;;  %v1000_v51 = vmul.f32 %v1523_v57, %v1970_v0 }
 0x32c   :  { %1532 = vrsqrt.f32 %v875_v32 }
 0x32d   :  { %1534 = vrsqrt.f32 %v872_v35  ;;  %v847_v36 = vpop.xlane.xlu0 %846  ;;  %v1016_v0 = vsel %vm689_vm13, 1.0, %v1000_v51 }
 0x32e   :  { %v1525_v37 = vpop.eup %1524  ;;  %v873_v38 = vmax.f32 %v847_v36, 1e-24  ;;  %v857_v39 = vpop.xlane.xlu1 %856 }
 0x32f   :  { %v1527_v40 = vpop.eup %1526  ;;  %v998_v42 = vmul.f32 %v1525_v37, %v1976_v1  ;;  %v878_v61 = vmax.f32 %v857_v39, 1e-24 }
 0x330   :  { %v999_v48 = vmul.f32 %v1527_v40, %v1996_v50  ;;  %1536 = vrsqrt.f32 %v873_v38 }
 0x331   :  { %v1014_v52 = vsel %vm689_vm13, 1.0, %v998_v42  ;;  %1538 = vrsqrt.f32 %v878_v61  ;;  %v859_v5 = vpop.xlane.xlu0 %858 }
 0x332   :  { %v1529_v53 = vpop.eup %1528  ;;  %v1015_v54 = vsel %vm689_vm13, 1.0, %v999_v48  ;;  %v879_v56 = vmax.f32 %v859_v5, 1e-24  ;;  %v853_v58 = vpop.xlane.xlu1 %852 }
 0x333   :  { %v1531_v60 = vpop.eup %1530  ;;  %v1288_v62 = vpack.c.bf16 %v1015_v54, %v1014_v52  ;;  %v1001_v1 = vmul.f32 %v1529_v53, %v1989_v43  ;;  %v876_v63 = vmax.f32 %v853_v58, 1e-24 }
 0x334   :  { %1540 = vrsqrt.f32 %v879_v56  ;;  %v1004_v45 = vmul.f32 %v1531_v60, %v2015_v47 }
 0x335   :  { %1289 = vst [vmem:[#allocation2] sm:$0xff] %v1288_v62   ;;  %v1017_v50 = vsel %vm689_vm13, 1.0, %v1001_v1  ;;  %1542 = vrsqrt.f32 %v876_v63  ;;  %v855_v11 = vpop.xlane.xlu0 %854 }
 0x336   :  { %v1533_v3 = vpop.eup %1532  ;;  %v1293_v4 = vpack.c.bf16 %v1017_v50, %v1016_v0  ;;  %v877_v9 = vmax.f32 %v855_v11, 1e-24  ;;  %v1020_v43 = vsel %vm689_vm13, 1.0, %v1004_v45 }
 0x337   :  { %v1535_v12 = vpop.eup %1534  ;;  %v1005_v8 = vmul.f32 %v1533_v3, %v2025_v10 }
 0x338   :  { %1332 = vst [vmem:[#allocation2 + $0x8] sm:$0xff] %v1293_v4   ;;  %1544 = vrsqrt.f32 %v877_v9  ;;  %v1002_v46 = vmul.f32 %v1535_v12, %v2035_v18 }
 0x339   :  { %v1021_v13 = vsel %vm689_vm13, 1.0, %v1005_v8  ;;  %v863_v15 = vpop.xlane.xlu0 %862 }
 0x33a   :  { %v1537_v47 = vpop.eup %1536  ;;  %v1303_v16 = vpack.c.bf16 %v1021_v13, %v1020_v43  ;;  %v881_v17 = vmax.f32 %v863_v15, 1e-24  ;;  %v861_v19 = vpop.xlane.xlu1 %860  ;;  %v1018_v10 = vsel %vm689_vm13, 1.0, %v1002_v46 }
 0x33b   :  { %v1539_v49 = vpop.eup %1538  ;;  %v1003_v20 = vmul.f32 %v1537_v47, %v2048_v22  ;;  %v880_v21 = vmax.f32 %v861_v19, 1e-24 }
 0x33c   :  { %1334 = vst [vmem:[#allocation2 + $0x18] sm:$0xff] %v1303_v16   ;;  %1546 = vrsqrt.f32 %v881_v17  ;;  %v1008_v55 = vmul.f32 %v1539_v49, %v2058_v30 }
 0x33d   :  { %v1019_v23 = vsel %vm689_vm13, 1.0, %v1003_v20  ;;  %1548 = vrsqrt.f32 %v880_v21  ;;  %v867_v18 = vpop.xlane.xlu0 %866 }
 0x33e   :  { %v1541_v24 = vpop.eup %1540  ;;  %v1298_v25 = vpack.c.bf16 %v1019_v23, %v1018_v10  ;;  %v883_v26 = vmax.f32 %v867_v18, 1e-24  ;;  %v865_v28 = vpop.xlane.xlu1 %864  ;;  %v1024_v59 = vsel %vm689_vm13, 1.0, %v1008_v55 }
 0x33f   :  { %v1543_v29 = vpop.eup %1542  ;;  %v1009_v22 = vmul.f32 %v1541_v24, %v2071_v34  ;;  %v882_v31 = vmax.f32 %v865_v28, 1e-24 }
 0x340   :  { %1333 = vst [vmem:[#allocation2 + $0x10] sm:$0xff] %v1298_v25   ;;  %1550 = vrsqrt.f32 %v883_v26  ;;  %v1006_v30 = vmul.f32 %v1543_v29, %v2081_v41 }
 0x341   :  { %v1025_v32 = vsel %vm689_vm13, 1.0, %v1009_v22  ;;  %1552 = vrsqrt.f32 %v882_v31 }
 0x342   :  { %v1545_v33 = vpop.eup %1544  ;;  %v1313_v35 = vpack.c.bf16 %v1025_v32, %v1024_v59  ;;  %v1022_v34 = vsel %vm689_vm13, 1.0, %v1006_v30 }
 0x343   :  { %v1007_v57 = vmul.f32 %v1545_v33, %v2094_v44 }
 0x344   :  { %1336 = vst [vmem:[#allocation2 + $0x28] sm:$0xff] %v1313_v35  }
 0x345   :  { %v1023_v36 = vsel %vm689_vm13, 1.0, %v1007_v57 }
 0x346   :  { %v1547_v37 = vpop.eup %1546  ;;  %v1308_v38 = vpack.c.bf16 %v1023_v36, %v1022_v34 }
 0x347   :  { %v1549_v39 = vpop.eup %1548  ;;  %v1011_v40 = vmul.f32 %v1547_v37, %v2110_v2 }
 0x348   :  { %1335 = vst [vmem:[#allocation2 + $0x20] sm:$0xff] %v1308_v38   ;;  %v1010_v41 = vmul.f32 %v1549_v39, %v2121_v7 }
 0x349   :  { %v1027_v42 = vsel %vm689_vm13, 1.0, %v1011_v40 }
 0x34a   :  { %v1551_v61 = vpop.eup %1550  ;;  %v1026_v44 = vsel %vm689_vm13, 1.0, %v1010_v41 }
 0x34b   :  { %v1553_v48 = vpop.eup %1552  ;;  %v1318_v51 = vpack.c.bf16 %v1027_v42, %v1026_v44  ;;  %v1013_v52 = vmul.f32 %v1551_v61, %v2133_v14 }
 0x34c   :  { %v1012_v5 = vmul.f32 %v1553_v48, %v2117_v6 }
 0x34d   :  { %1337 = vst [vmem:[#allocation2 + $0x30] sm:$0xff] %v1318_v51   ;;  %v1029_v2 = vsel %vm689_vm13, 1.0, %v1013_v52 }
 0x34e   :  { %v1028_v7 = vsel %vm689_vm13, 1.0, %v1012_v5 }
 0x34f   :  { %v1323_v53 = vpack.c.bf16 %v1029_v2, %v1028_v7 }
 0x351   :  { %1338 = vst [vmem:[#allocation2 + $0x38] sm:$0xff] %v1323_v53  }
 0x352   :  { %1565 = shalt.err (!%p1562_p4)
}
 0x353   :  { %s1566_s30 = scalar_lea.hbm %s2215_s4, 1024 }
 0x354   :  { %p1567_p5 = scmp.ne.s32.totalorder %s2215_s4, %s1566_s30  ;;  %p1570_p6 = scmp.lt.u32.totalorder %s1566_s30, %s2215_s4 }
 0x356   :  { %p1572_p7 = pnand %p1570_p6, %p1567_p5 }
 0x358   :  { %1575 = shalt.err (!%p1572_p7)
}
 0x359   :  { %s1581_s2 = smov 64   ;;  %s1582_s9 = smov 4  }
 0x35a   :  { %1121 = dma.vmem_to_hbm [thread:$0]  %s1116_s26, 1024, %s2215_s4, [#allocation3], %s1581_s2, %s1581_s2, %s1582_s9  }
 0x35b   :  { %1576 = dma.done.wait [#allocation3], 1024  }
 0x35c   :  { %1577 = vsyncadd [#allocation3], 4294966272 }
 0x35d   :  { %1129 = vsyncpa [#allocation3], 1 }

// kernel: agnn_conv_op.6
= control target key start
LH: loop header
LB: loop body
LE: loop exit
PB: predicated region body
PF: predicated region fallthrough
CT: control target
= control target key end

     0   :  { %v47_v0 = vlaneseq  ;;  %s2180_s1 = inlined_call_operand.vmem [shape: bf16[128,128], index: 1, kind: input, shape index: {}]   ;;  %s2181_s3 = inlined_call_operand.vmem [shape: bf16[1,128], index: 3, kind: input, shape index: {}]   ;;  %s2182_s2 = inlined_call_operand.vmem [shape: bf16[128,128], index: 2, kind: input, shape index: {}]   ;;  %s2183_s0 = inlined_call_operand.vmem [shape: s8[128,128], index: 0, kind: input, shape index: {}]   ;;  %s2184_s5 = inlined_call_operand.vmem [shape: bf16[128,128], index: 5, kind: output, shape index: {1}]   ;;  %s2185_s4 = inlined_call_operand.vmem [shape: bf16[128,128], index: 4, kind: output, shape index: {0}]  }
   0x1   :  { %v1426_v1 = vld [vmem:[%s2180_s1] sm:$0xff]   ;;  %v1427_v2 = vld [vmem:[%s2180_s1 + $0x8] sm:$0xff]   ;;  %v1428_v5 = vld [vmem:[%s2180_s1 + $0x10] sm:$0xff]  }
   0x2   :  { %1358 = vmatprep.subr.bf16.mxu0 %v1426_v1  ;;  %v48_v3 = vshrl.u32 %v47_v0, 7  ;;  %v43_v6 = vld [vmem:[%s2181_s3] sm:$0x1]  ;;  %v28_v10 = vld [vmem:[%s2180_s1 + $0x4] sm:$0xf]  ;;  %v1429_v14 = vld [vmem:[%s2180_s1 + $0x18] sm:$0xff]  }
   0x3   :  { %1359 = vmatpush3.bf16.xpose.msra.mxu0 %v1426_v1  ;;  %v45_v7 = vpack.i.b16 %v43_v6, %v43_v6  ;;  %v27_v9 = vld [vmem:[%s2180_s1] sm:$0xf]  ;;  %v37_v12 = vld [vmem:[%s2180_s1 + $0x28] sm:$0xf]  ;;  %v38_v13 = vld [vmem:[%s2180_s1 + $0x2c] sm:$0xf] }
   0x4   :  { %1360 = vmatprep.subr.bf16.mxu0 %v1427_v2  ;;  %v49_v4 = vsub.s32 0, %v48_v3  ;;  %v39_v15 = vld [vmem:[%s2180_s1 + $0x30] sm:$0xf]  ;;  %v40_v16 = vld [vmem:[%s2180_s1 + $0x34] sm:$0xf]  ;;  %v1434_v17 = vld [vmem:[%s2182_s2] sm:$0xff]  }
   0x5   :  { %v41_v20 = vld [vmem:[%s2180_s1 + $0x38] sm:$0xf]  ;;  %v42_v21 = vld [vmem:[%s2180_s1 + $0x3c] sm:$0xf]  ;;  %v1435_v22 = vld [vmem:[%s2182_s2 + $0x8] sm:$0xff]   ;;  %1390 = vmatprep.subr.bf16.mxu1 %v1434_v17  ;;  %v1538_v1 = vmov 0  }
   0x6   :  { %v50_v8 = vrot.slane %v45_v7, %v49_v4  ;;  %v1436_v23 = vld [vmem:[%s2182_s2 + $0x10] sm:$0xff]   ;;  %1391 = vmatpush3.bf16.msra.mxu1 %v1434_v17  ;;  %v1430_v34 = vld [vmem:[%s2180_s1 + $0x20] sm:$0xff]   ;;  %v1431_v35 = vld [vmem:[%s2180_s1 + $0x28] sm:$0xff]  }
   0x7   :  { %1392 = vmatprep.subr.bf16.mxu1 %v1435_v22  ;;  %v1432_v36 = vld [vmem:[%s2180_s1 + $0x30] sm:$0xff]   ;;  %v1433_v37 = vld [vmem:[%s2180_s1 + $0x38] sm:$0xff]   ;;  %v29_v38 = vld [vmem:[%s2180_s1 + $0x8] sm:$0xf] }
   0x8   :  { %v1589_v11 = vcombine.low %v50_v8, %v50_v8  ;;  %v30_v39 = vld [vmem:[%s2180_s1 + $0xc] sm:$0xf]  ;;  %v31_v40 = vld [vmem:[%s2180_s1 + $0x10] sm:$0xf]  ;;  %v32_v41 = vld [vmem:[%s2180_s1 + $0x14] sm:$0xf] }
   0x9   :  { %v33_v48 = vld [vmem:[%s2180_s1 + $0x18] sm:$0xf]  ;;  %v34_v49 = vld [vmem:[%s2180_s1 + $0x1c] sm:$0xf]  ;;  %v35_v50 = vld [vmem:[%s2180_s1 + $0x20] sm:$0xf] }
   0xa   :  { %v55_v18 = vmul.bf16 %v1589_v11, %v27_v9  ;;  %v56_v19 = vmul.bf16 %v1589_v11, %v28_v10  ;;  %v65_v25 = vmul.bf16 %v1589_v11, %v37_v12  ;;  %v66_v26 = vmul.bf16 %v1589_v11, %v38_v13  ;;  %1393 = vmatpush3.bf16.msra.mxu1 %v1435_v22  ;;  %v36_v51 = vld [vmem:[%s2180_s1 + $0x24] sm:$0xf]  ;;  %v1437_v58 = vld [vmem:[%s2182_s2 + $0x18] sm:$0xff]   ;;  %v1439_v60 = vld [vmem:[%s2182_s2 + $0x28] sm:$0xff]  }
   0xb   :  { %1361 = vmatpush3.bf16.xpose.msra.mxu0 %v1427_v2  ;;  %v67_v27 = vmul.bf16 %v1589_v11, %v39_v15  ;;  %v68_v28 = vmul.bf16 %v1589_v11, %v40_v16  ;;  %v69_v30 = vmul.bf16 %v1589_v11, %v41_v20  ;;  %v70_v31 = vmul.bf16 %v1589_v11, %v42_v21  ;;  %v1438_v59 = vld [vmem:[%s2182_s2 + $0x20] sm:$0xff]   ;;  %v1440_v61 = vld [vmem:[%s2182_s2 + $0x30] sm:$0xff]   ;;  %v1441_v62 = vld [vmem:[%s2182_s2 + $0x38] sm:$0xff]  }
   0xc   :  { %1362 = vmatprep.subr.bf16.mxu0 %v1428_v5  ;;  %v1120_v24 = vcombine.low %v55_v18, %v56_v19  ;;  %v1125_v29 = vcombine.low %v65_v25, %v66_v26  ;;  %1394 = vmatprep.subr.bf16.mxu1 %v1436_v23  ;;  %v57_v42 = vmul.bf16 %v1589_v11, %v29_v38  ;;  %v280_v63 = vld [vmem:[%s2183_s0] sm:$0xff]  ;;  %v282_v20 = vld [vmem:[%s2183_s0 + $0x10] sm:$0xff] }
   0xd   :  { %v1126_v32 = vcombine.low %v67_v27, %v68_v28  ;;  %v1127_v33 = vcombine.low %v69_v30, %v70_v31  ;;  %v58_v43 = vmul.bf16 %v1589_v11, %v30_v39  ;;  %v59_v44 = vmul.bf16 %v1589_v11, %v31_v40 }
   0xe   :  { %1374 = vmatprep.mubr.bf16.mxu0 %v1120_v24  ;;  %1395 = vmatpush3.bf16.msra.mxu1 %v1436_v23  ;;  %v60_v45 = vmul.bf16 %v1589_v11, %v32_v41  ;;  %v61_v52 = vmul.bf16 %v1589_v11, %v33_v48  ;;  %v62_v53 = vmul.bf16 %v1589_v11, %v34_v49 }
   0xf   :  { %v1121_v46 = vcombine.low %v57_v42, %v58_v43  ;;  %v63_v54 = vmul.bf16 %v1589_v11, %v35_v50  ;;  %v64_v55 = vmul.bf16 %v1589_v11, %v36_v51  ;;  %1396 = vmatprep.subr.bf16.mxu1 %v1437_v58  ;;  %vm284_vm0 = vnez %v280_v63  ;;  %v283_v51 = vld [vmem:[%s2183_s0 + $0x18] sm:$0xff] }
  0x10   :  { %v1122_v47 = vcombine.low %v59_v44, %v60_v45  ;;  %v1123_v56 = vcombine.low %v61_v52, %v62_v53  ;;  %v320_v2 = vsel %vm284_vm0, 16843009, %v1538_v1  ;;  %vm286_vm5 = vnez %v282_v20 }
  0x11   :  { %v1124_v57 = vcombine.low %v63_v54, %v64_v55  ;;  %v324_v3 = vunpack.c.0.s8 %v320_v2  ;;  %v325_v4 = vunpack.c.1.s8 %v320_v2  ;;  %v326_v6 = vunpack.c.2.s8 %v320_v2 }
  0x12   :  { %1397 = vmatpush3.bf16.msra.mxu1 %v1437_v58  ;;  %v327_v7 = vunpack.c.3.s8 %v320_v2  ;;  %v322_v38 = vsel %vm286_vm5, 16843009, %v1538_v1  ;;  %vm287_vm14 = vnez %v283_v51 }
  0x13   :  { %1363 = vmatpush3.bf16.xpose.msra.mxu0 %v1428_v5  ;;  %1398 = vmatprep.subr.bf16.mxu1 %v1438_v59  ;;  %v281_v5 = vld [vmem:[%s2183_s0 + $0x8] sm:$0xff]  ;;  %v340_v8 = vpack.c.b16 %v324_v3, %v324_v3  ;;  %v342_v9 = vpack.c.b16 %v325_v4, %v325_v4  ;;  %v344_v10 = vpack.c.b16 %v326_v6, %v326_v6  ;;  %v333_v48 = vunpack.c.1.s8 %v322_v38 }
  0x14   :  { %1364 = vmatprep.subr.bf16.mxu0 %v1429_v14  ;;  %vm285_vm1 = vnez %v281_v5  ;;  %v346_v12 = vpack.c.b16 %v327_v7, %v327_v7  ;;  %v334_v49 = vunpack.c.2.s8 %v322_v38  ;;  %v335_v50 = vunpack.c.3.s8 %v322_v38 }
  0x15   :  { %v321_v11 = vsel %vm285_vm1, 16843009, %v1538_v1  ;;  %v341_v13 = vpack.c.b8 %v340_v8, %v340_v8  ;;  %v345_v15 = vpack.c.b8 %v344_v10, %v344_v10  ;;  %v358_v4 = vpack.c.b16 %v333_v48, %v333_v48 }
  0x16   :  { %1399 = vmatpush3.bf16.msra.mxu1 %v1438_v59  ;;  %v328_v16 = vunpack.c.0.s8 %v321_v11  ;;  %v347_v17 = vpack.c.b8 %v346_v12, %v346_v12  ;;  %v329_v18 = vunpack.c.1.s8 %v321_v11  ;;  %v330_v19 = vunpack.c.2.s8 %v321_v11 }
  0x17   :  { %1400 = vmatprep.subr.bf16.mxu1 %v1439_v60  ;;  %vm372_vm2 = vnez %v341_v13  ;;  %vm374_vm4 = vnez %v345_v15  ;;  %v331_v22 = vunpack.c.3.s8 %v321_v11  ;;  %v360_v5 = vpack.c.b16 %v334_v49, %v334_v49 }
  0x18   :  { %v348_v21 = vpack.c.b16 %v328_v16, %v328_v16  ;;  %v388_v23 = vsel %vm372_vm2, 16843009, %v1538_v1  ;;  %vm1701_vm6 = vnez %v347_v17  ;;  %v390_v27 = vsel %vm374_vm4, 16843009, %v1538_v1 }
  0x19   :  { %v350_v28 = vpack.c.b16 %v329_v18, %v329_v18  ;;  %v391_v41 = vsel %vm1701_vm6, 16843009, %v1538_v1  ;;  %v406_v42 = vunpack.c.0.s8 %v390_v27  ;;  %v362_v6 = vpack.c.b16 %v335_v50, %v335_v50 }
  0x1a   :  { %1401 = vmatpush3.bf16.msra.mxu1 %v1439_v60  ;;  %v407_v54 = vunpack.c.0.s8 %v391_v41  ;;  %v323_v13 = vsel %vm287_vm14, 16843009, %v1538_v1  ;;  %v361_v20 = vpack.c.b8 %v360_v5, %v360_v5 }
  0x1b   :  { %1365 = vmatpush3.bf16.xpose.msra.mxu0 %v1429_v14  ;;  %1402 = vmatprep.subr.bf16.mxu1 %v1440_v61  ;;  %v343_v14 = vpack.c.b8 %v342_v9, %v342_v9  ;;  %v351_v44 = vpack.c.b8 %v350_v28, %v350_v28  ;;  %vm1721_vm10 = vcmp.ne.s32.totalorder %v406_v42, 0  ;;  %v337_v26 = vunpack.c.1.s8 %v323_v13 }
  0x1c   :  { %1366 = vmatprep.subr.bf16.mxu0 %v1430_v34  ;;  %vm1738_vm15 = vcmp.ne.s32.totalorder %v407_v54, 0  ;;  %vm1772_vm5 = vnez %v361_v20 }
  0x1d   :  { %vm373_vm3 = vnez %v343_v14  ;;  %vm1725_vm11 = vnez %v351_v44  ;;  %vm1147_vm1 = vmpackc.low %vm1738_vm15, %vm1721_vm10 }
  0x1e   :  { %1403 = vmatpush3.bf16.msra.mxu1 %v1440_v61  ;;  %v389_v24 = vsel %vm373_vm3, 16843009, %v1538_v1  ;;  %v393_v10 = vsel %vm1725_vm11, 16843009, %v1538_v1 }
  0x1f   :  { %1404 = vmatprep.subr.bf16.mxu1 %v1441_v62 }
  0x22   :  { %1405 = vmatpush3.bf16.msra.mxu1 %v1441_v62 }
  0x23   :  { %1367 = vmatpush3.bf16.xpose.msra.mxu0 %v1430_v34 }
  0x24   :  { %1368 = vmatprep.subr.bf16.mxu0 %v1431_v35 }
  0x2b   :  { %1369 = vmatpush3.bf16.xpose.msra.mxu0 %v1431_v35 }
  0x2c   :  { %1370 = vmatprep.subr.bf16.mxu0 %v1432_v36 }
  0x33   :  { %1371 = vmatpush3.bf16.xpose.msra.mxu0 %v1432_v36  ;;  %v404_v36 = vunpack.c.0.s8 %v388_v23  ;;  %v409_v23 = vunpack.c.0.s8 %v393_v10 }
  0x34   :  { %1372 = vmatprep.subr.bf16.mxu0 %v1433_v37 }
  0x35   :  { %vm1713_vm8 = vcmp.ne.s32.totalorder %v404_v36, 0 }
  0x3b   :  { %1373 = vmatpush3.bf16.xpose.msra.mxu0 %v1433_v37  ;;  %v405_v37 = vunpack.c.0.s8 %v389_v24 }
  0x3d   :  { %vm1717_vm9 = vcmp.ne.s32.totalorder %v405_v37, 0 }
  0x3e   :  { %vm1144_vm0 = vmpackc.low %vm1717_vm9, %vm1713_vm8 }
  0x42   :  { %1375 = vmatmul.mubr.bf16.vlgmr.msra.gmra.mrb[0].mxu0 %v1121_v46 }
  0x43   :  { %1378 = vmatprep.mubr.bf16.mxu0 %v1122_v47  ;;  %v332_v47 = vunpack.c.0.s8 %v322_v38 }
  0x45   :  { %v356_v63 = vpack.c.b16 %v332_v47, %v332_v47 }
  0x47   :  { %v357_v17 = vpack.c.b8 %v356_v63, %v356_v63 }
  0x49   :  { %vm1764_vm3 = vnez %v357_v17 }
  0x4a   :  { %1379 = vmatmul.mubr.bf16.gmra.mrb[4].mxu0 %v1123_v56  ;;  %v396_v53 = vsel %vm1764_vm3, 16843009, %v1538_v1 }
  0x4b   :  { %1382 = vmatprep.mubr.bf16.mxu0 %v1124_v57  ;;  %v398_v57 = vsel %vm1772_vm5, 16843009, %v1538_v1 }
  0x4c   :  { %v414_v10 = vunpack.c.0.s8 %v398_v57 }
  0x4e   :  { %vm1835_vm3 = vcmp.ne.s32.totalorder %v414_v10, 0 }
  0x52   :  { %1383 = vmatmul.mubr.bf16.gmra.mrb[8].mxu0 %v1125_v29  ;;  %v352_v29 = vpack.c.b16 %v330_v19, %v330_v19  ;;  %v359_v19 = vpack.c.b8 %v358_v4, %v358_v4 }
  0x53   :  { %1386 = vmatprep.mubr.bf16.mxu0 %v1126_v32  ;;  %v349_v32 = vpack.c.b8 %v348_v21, %v348_v21  ;;  %v363_v21 = vpack.c.b8 %v362_v6, %v362_v6 }
  0x54   :  { %v353_v45 = vpack.c.b8 %v352_v29, %v352_v29  ;;  %vm1768_vm4 = vnez %v359_v19 }
  0x55   :  { %vm376_vm7 = vnez %v349_v32  ;;  %v339_v32 = vunpack.c.3.s8 %v323_v13  ;;  %vm1776_vm6 = vnez %v363_v21  ;;  %v397_v56 = vsel %vm1768_vm4, 16843009, %v1538_v1 }
  0x56   :  { %v392_v58 = vsel %vm376_vm7, 16843009, %v1538_v1  ;;  %vm1730_vm12 = vnez %v353_v45  ;;  %vm1790_vm7 = vcmp.ne.s32.totalorder %v409_v23, 0  ;;  %v399_v59 = vsel %vm1776_vm6, 16843009, %v1538_v1 }
  0x57   :  { %v394_v12 = vsel %vm1730_vm12, 16843009, %v1538_v1  ;;  %v408_v15 = vunpack.c.0.s8 %v392_v58  ;;  %v370_v49 = vpack.c.b16 %v339_v32, %v339_v32  ;;  %v413_v9 = vunpack.c.0.s8 %v397_v56 }
  0x58   :  { %v410_v24 = vunpack.c.0.s8 %v394_v12 }
  0x59   :  { %vm1760_vm2 = vcmp.ne.s32.totalorder %v408_v15, 0  ;;  %v371_v5 = vpack.c.b8 %v370_v49, %v370_v49 }
  0x5a   :  { %1387 = vmatmul.mubr.bf16.gmra.mrb[12].mxu0 %v1127_v33  ;;  %v354_v33 = vpack.c.b16 %v331_v22, %v331_v22  ;;  %vm1794_vm8 = vcmp.ne.s32.totalorder %v410_v24, 0  ;;  %vm1150_vm10 = vmpackc.low %vm1790_vm7, %vm1760_vm2 }
  0x5b   :  { %vm387_vm15 = vnez %v371_v5 }
  0x5c   :  { %v355_v46 = vpack.c.b8 %v354_v33, %v354_v33 }
  0x5e   :  { %vm1734_vm13 = vnez %v355_v46  ;;  %v366_v46 = vpack.c.b16 %v337_v26, %v337_v26 }
  0x5f   :  { %v395_v16 = vsel %vm1734_vm13, 16843009, %v1538_v1 }
 0x115   :  { %v1376_v25 = vpop.f32.mrb[0].mxu0 }
 0x116   :  { %v292_v30 = vmul.f32 1.442695, %v1376_v25  ;;  %v217_v31 = vpop.f32.mrb[1].mxu0  ;;  %v336_v25 = vunpack.c.0.s8 %v323_v13 }
 0x117   :  { %v288_v34 = vmul.f32 1.442695, %v217_v31  ;;  %v1377_v35 = vpop.f32.mrb[2].mxu0  ;;  %v338_v31 = vunpack.c.2.s8 %v323_v13  ;;  %v415_v13 = vunpack.c.0.s8 %v399_v59 }
 0x118   :  { %1442 = vpow2.f32 %v292_v30  ;;  %v294_v39 = vmul.f32 1.442695, %v1377_v35  ;;  %v220_v40 = vpop.f32.mrb[3].mxu0  ;;  %v411_v30 = vunpack.c.0.s8 %v395_v16  ;;  %v364_v45 = vpack.c.b16 %v336_v25, %v336_v25 }
 0x119   :  { %1444 = vpow2.f32 %v288_v34  ;;  %v290_v43 = vmul.f32 1.442695, %v220_v40  ;;  %v368_v48 = vpack.c.b16 %v338_v31, %v338_v31  ;;  %vm1839_vm2 = vcmp.ne.s32.totalorder %v415_v13, 0 }
 0x11a   :  { %1446 = vpow2.f32 %v294_v39  ;;  %vm1801_vm9 = vcmp.ne.s32.totalorder %v411_v30, 0  ;;  %vm1159_vm5 = vmpackc.low %vm1839_vm2, %vm1835_vm3  ;;  %v1539_v40 = vmov 32  }
 0x11b   :  { %1448 = vpow2.f32 %v290_v43  ;;  %v369_v4 = vpack.c.b8 %v368_v48, %v368_v48  ;;  %vm1153_vm11 = vmpackc.low %vm1801_vm9, %vm1794_vm8  ;;  %1424 = vset.pattern.permute.xlu1 %v1539_v40  ;;  %1425 = vset.pattern.permute.xlu0 %v1539_v40 }
 0x11d   :  { %v1380_v55 = vpop.f32.mrb[4].mxu0  ;;  %vm386_vm14 = vnez %v369_v4 }
 0x11e   :  { %v300_v60 = vmul.f32 1.442695, %v1380_v55  ;;  %v233_v61 = vpop.f32.mrb[5].mxu0  ;;  %v402_v26 = vsel %vm386_vm14, 16843009, %v1538_v1 }
 0x11f   :  { %v296_v2 = vmul.f32 1.442695, %v233_v61  ;;  %v1381_v3 = vpop.f32.mrb[6].mxu0  ;;  %v367_v61 = vpack.c.b8 %v366_v46, %v366_v46 }
 0x120   :  { %1450 = vpow2.f32 %v300_v60  ;;  %v302_v7 = vmul.f32 1.442695, %v1381_v3  ;;  %v236_v8 = vpop.f32.mrb[7].mxu0  ;;  %v365_v60 = vpack.c.b8 %v364_v45, %v364_v45  ;;  %v412_v3 = vunpack.c.0.s8 %v396_v53 }
 0x121   :  { %1452 = vpow2.f32 %v296_v2  ;;  %v298_v11 = vmul.f32 1.442695, %v236_v8  ;;  %vm385_vm13 = vnez %v367_v61 }
 0x122   :  { %v1443_v14 = vpop.eup %1442  ;;  %1454 = vpow2.f32 %v302_v7  ;;  %vm384_vm12 = vnez %v365_v60  ;;  %v401_v24 = vsel %vm385_vm13, 16843009, %v1538_v1 }
 0x123   :  { %v1445_v18 = vpop.eup %1444  ;;  %1456 = vpow2.f32 %v298_v11  ;;  %v400_v23 = vsel %vm384_vm12, 16843009, %v1538_v1  ;;  %v417_v32 = vunpack.c.0.s8 %v401_v24 }
 0x124   :  { %v1447_v22 = vpop.eup %1446  ;;  %v416_v31 = vunpack.c.0.s8 %v400_v23 }
 0x125   :  { %v1449_v27 = vpop.eup %1448  ;;  %v1384_v28 = vpop.f32.mrb[8].mxu0  ;;  %v1148_v29 = vpack.c.bf16 %v1447_v22, %v1443_v14  ;;  %vm433_vm7 = vcmp.ne.s32.totalorder %v417_v32, 0 }
 0x126   :  { %v308_v33 = vmul.f32 1.442695, %v1384_v28  ;;  %v249_v34 = vpop.f32.mrb[9].mxu0  ;;  %v1145_v35 = vpack.c.bf16 %v1449_v27, %v1445_v18  ;;  %v403_v27 = vsel %vm387_vm15, 16843009, %v1538_v1  ;;  %vm432_vm6 = vcmp.ne.s32.totalorder %v416_v31, 0 }
 0x127   :  { %v304_v38 = vmul.f32 1.442695, %v249_v34  ;;  %v1385_v39 = vpop.f32.mrb[10].mxu0  ;;  %v419_v34 = vunpack.c.0.s8 %v403_v27  ;;  %v1920_v27 = vand.u32 127, %v47_v0 }
 0x128   :  { %1458 = vpow2.f32 %v308_v33  ;;  %v310_v43 = vmul.f32 1.442695, %v1385_v39  ;;  %v252_v44 = vpop.f32.mrb[11].mxu0  ;;  %1406 = vmatprep.mubr.msk.bf16.mxu1 %vm1144_vm0, %v1145_v35  ;;  %vm1827_vm0 = vcmp.ne.s32.totalorder %v412_v3, 0  ;;  %v418_v33 = vunpack.c.0.s8 %v402_v26 }
 0x129   :  { %1460 = vpow2.f32 %v304_v38  ;;  %v306_v47 = vmul.f32 1.442695, %v252_v44  ;;  %1407 = vmatmul.mubr.msk.bf16.vlgmr.msra.gmra.mrb[0].mxu1 %vm1147_vm1, %v1148_v29  ;;  %vm1831_vm1 = vcmp.ne.s32.totalorder %v413_v9, 0  ;;  %vm435_vm9 = vcmp.ne.s32.totalorder %v419_v34, 0 }
 0x12a   :  { %v1451_v50 = vpop.eup %1450  ;;  %1462 = vpow2.f32 %v310_v43  ;;  %vm1156_vm4 = vmpackc.low %vm1831_vm1, %vm1827_vm0  ;;  %vm434_vm8 = vcmp.ne.s32.totalorder %v418_v33, 0 }
 0x12b   :  { %v1453_v54 = vpop.eup %1452  ;;  %1464 = vpow2.f32 %v306_v47 }
 0x12c   :  { %v1455_v58 = vpop.eup %1454 }
 0x12d   :  { %v1457_v62 = vpop.eup %1456  ;;  %v1388_v63 = vpop.f32.mrb[12].mxu0  ;;  %v1154_v2 = vpack.c.bf16 %v1455_v58, %v1451_v50 }
 0x12e   :  { %v316_v6 = vmul.f32 1.442695, %v1388_v63  ;;  %v265_v7 = vpop.f32.mrb[13].mxu0  ;;  %v1151_v8 = vpack.c.bf16 %v1457_v62, %v1453_v54 }
 0x12f   :  { %v312_v11 = vmul.f32 1.442695, %v265_v7  ;;  %v1389_v12 = vpop.f32.mrb[14].mxu0 }
 0x130   :  { %1466 = vpow2.f32 %v316_v6  ;;  %v318_v14 = vmul.f32 1.442695, %v1389_v12  ;;  %v268_v15 = vpop.f32.mrb[15].mxu0  ;;  %1410 = vmatprep.mubr.msk.bf16.mxu1 %vm1150_vm10, %v1151_v8  ;;  %vm1162_vm10 = vmpackc.low %vm433_vm7, %vm432_vm6 }
 0x131   :  { %1468 = vpow2.f32 %v312_v11  ;;  %v314_v16 = vmul.f32 1.442695, %v268_v15  ;;  %1411 = vmatmul.mubr.msk.bf16.gmra.mrb[4].mxu1 %vm1153_vm11, %v1154_v2  ;;  %vm1165_vm11 = vmpackc.low %vm435_vm9, %vm434_vm8 }
 0x132   :  { %v1459_v17 = vpop.eup %1458  ;;  %1470 = vpow2.f32 %v318_v14 }
 0x133   :  { %v1461_v21 = vpop.eup %1460  ;;  %1472 = vpow2.f32 %v314_v16 }
 0x134   :  { %v1463_v25 = vpop.eup %1462 }
 0x135   :  { %v1465_v28 = vpop.eup %1464  ;;  %v1160_v29 = vpack.c.bf16 %v1463_v25, %v1459_v17 }
 0x136   :  { %v1157_v30 = vpack.c.bf16 %v1465_v28, %v1461_v21 }
 0x138   :  { %1414 = vmatprep.mubr.msk.bf16.mxu1 %vm1156_vm4, %v1157_v30 }
 0x139   :  { %1415 = vmatmul.mubr.msk.bf16.gmra.mrb[8].mxu1 %vm1159_vm5, %v1160_v29 }
 0x13a   :  { %v1467_v1 = vpop.eup %1466 }
 0x13b   :  { %v1469_v35 = vpop.eup %1468 }
 0x13c   :  { %v1471_v36 = vpop.eup %1470 }
 0x13d   :  { %v1473_v37 = vpop.eup %1472  ;;  %v1166_v38 = vpack.c.bf16 %v1471_v36, %v1467_v1 }
 0x13e   :  { %v1163_v39 = vpack.c.bf16 %v1473_v37, %v1469_v35 }
 0x140   :  { %1418 = vmatprep.mubr.msk.bf16.mxu1 %vm1162_vm10, %v1163_v39 }
 0x141   :  { %1419 = vmatmul.mubr.msk.bf16.gmra.mrb[12].mxu1 %vm1165_vm11, %v1166_v38 }
 0x1fc   :  { %v1855_v41 = vpop.f32.mrb[0].mxu1 }
 0x1fd   :  { %1474 = vrcp.f32 %v1855_v41  ;;  %v1858_v42 = vpop.f32.mrb[1].mxu1  ;;  %vm623_vm12 = vcmp.gt.f32.partialorder %v1855_v41, 0.0 }
 0x1fe   :  { %1476 = vrcp.f32 %v1858_v42  ;;  %v1861_v43 = vpop.f32.mrb[2].mxu1  ;;  %vm621_vm13 = vcmp.gt.f32.partialorder %v1858_v42, 0.0 }
 0x1ff   :  { %1478 = vrcp.f32 %v1861_v43  ;;  %v1864_v44 = vpop.f32.mrb[3].mxu1  ;;  %vm624_vm14 = vcmp.gt.f32.partialorder %v1861_v43, 0.0 }
 0x200   :  { %1480 = vrcp.f32 %v1864_v44  ;;  %vm622_vm15 = vcmp.gt.f32.partialorder %v1864_v44, 0.0 }
 0x204   :  { %v1867_v45 = vpop.f32.mrb[4].mxu1 }
 0x205   :  { %1482 = vrcp.f32 %v1867_v45  ;;  %v1870_v46 = vpop.f32.mrb[5].mxu1  ;;  %vm627_vm0 = vcmp.gt.f32.partialorder %v1867_v45, 0.0 }
 0x206   :  { %v1872_v47 = vpop.f32.mrb[6].mxu1  ;;  %vm625_vm3 = vcmp.gt.f32.partialorder %v1870_v46, 0.0 }
 0x207   :  { %v1475_v48 = vpop.eup %1474  ;;  %1484 = vrcp.f32 %v1872_v47  ;;  %v1875_v49 = vpop.f32.mrb[7].mxu1  ;;  %vm628_vm1 = vcmp.gt.f32.partialorder %v1872_v47, 0.0 }
 0x208   :  { %v1477_v50 = vpop.eup %1476  ;;  %1486 = vrcp.f32 %v1870_v46  ;;  %v671_v51 = vsel %vm623_vm12, %v1475_v48, 0.0  ;;  %vm626_vm2 = vcmp.gt.f32.partialorder %v1875_v49, 0.0  ;;  %vm687_vm12 = vcmp.lt.s32.totalorder %v1920_v27, 32 }
 0x209   :  { %v1479_v52 = vpop.eup %1478  ;;  %1488 = vrcp.f32 %v1875_v49  ;;  %701 = vperm.xlu1 %1424, %v671_v51   ;;  %v669_v53 = vsel %vm621_vm13, %v1477_v50, 0.0  ;;  %vm688_vm13 = vcmp.eq.s32.totalorder %v1920_v27, 32 }
 0x20a   :  { %v1481_v54 = vpop.eup %1480  ;;  %691 = vperm.xlu0 %1425, %v669_v53   ;;  %v672_v56 = vsel %vm624_vm14, %v1479_v52, 0.0 }
 0x20b   :  { %v670_v58 = vsel %vm622_vm15, %v1481_v54, 0.0 }
 0x20c   :  { %v1882_v55 = vpop.f32.mrb[8].mxu1 }
 0x20d   :  { %1490 = vrcp.f32 %v1882_v55  ;;  %706 = vperm.xlu1 %1424, %v672_v56   ;;  %v1886_v57 = vpop.f32.mrb[9].mxu1  ;;  %vm631_vm4 = vcmp.gt.f32.partialorder %v1882_v55, 0.0 }
 0x20e   :  { %696 = vperm.xlu0 %1425, %v670_v58   ;;  %v1888_v59 = vpop.f32.mrb[10].mxu1  ;;  %vm629_vm6 = vcmp.gt.f32.partialorder %v1886_v57, 0.0 }
 0x20f   :  { %v1483_v60 = vpop.eup %1482  ;;  %1492 = vrcp.f32 %v1888_v59  ;;  %v1891_v61 = vpop.f32.mrb[11].mxu1  ;;  %vm632_vm5 = vcmp.gt.f32.partialorder %v1888_v59, 0.0 }
 0x210   :  { %1494 = vrcp.f32 %v1886_v57  ;;  %v675_v62 = vsel %vm627_vm0, %v1483_v60, 0.0  ;;  %vm630_vm7 = vcmp.gt.f32.partialorder %v1891_v61, 0.0 }
 0x211   :  { %v1485_v63 = vpop.eup %1484  ;;  %1496 = vrcp.f32 %v1891_v61 }
 0x212   :  { %v1487_v2 = vpop.eup %1486  ;;  %721 = vperm.xlu0 %1425, %v675_v62   ;;  %v676_v3 = vsel %vm628_vm1, %v1485_v63, 0.0 }
 0x213   :  { %v1489_v4 = vpop.eup %1488  ;;  %726 = vperm.xlu1 %1424, %v676_v3   ;;  %v673_v7 = vsel %vm625_vm3, %v1487_v2, 0.0 }
 0x214   :  { %v1897_v5 = vpop.f32.mrb[12].mxu1  ;;  %v674_v9 = vsel %vm626_vm2, %v1489_v4, 0.0 }
 0x215   :  { %1498 = vrcp.f32 %v1897_v5  ;;  %v1901_v6 = vpop.f32.mrb[13].mxu1  ;;  %vm635_vm8 = vcmp.gt.f32.partialorder %v1897_v5, 0.0 }
 0x216   :  { %711 = vperm.xlu0 %1425, %v673_v7   ;;  %v1904_v8 = vpop.f32.mrb[14].mxu1  ;;  %1500 = vrcp.f32 %v1901_v6  ;;  %vm633_vm10 = vcmp.gt.f32.partialorder %v1901_v6, 0.0 }
 0x217   :  { %v1491_v10 = vpop.eup %1490  ;;  %716 = vperm.xlu1 %1424, %v674_v9   ;;  %v1907_v11 = vpop.f32.mrb[15].mxu1  ;;  %vm636_vm11 = vcmp.gt.f32.partialorder %v1904_v8, 0.0 }
 0x218   :  { %1502 = vrcp.f32 %v1907_v11  ;;  %v679_v12 = vsel %vm631_vm4, %v1491_v10, 0.0  ;;  %vm634_vm9 = vcmp.gt.f32.partialorder %v1907_v11, 0.0 }
 0x219   :  { %v1493_v13 = vpop.eup %1492  ;;  %1504 = vrcp.f32 %v1904_v8 }
 0x21a   :  { %v1495_v14 = vpop.eup %1494  ;;  %741 = vperm.xlu0 %1425, %v679_v12   ;;  %v680_v15 = vsel %vm632_vm5, %v1493_v13, 0.0 }
 0x21b   :  { %v1497_v16 = vpop.eup %1496  ;;  %746 = vperm.xlu1 %1424, %v680_v15   ;;  %v677_v17 = vsel %vm629_vm6, %v1495_v14, 0.0 }
 0x21c   :  { %v678_v18 = vsel %vm630_vm7, %v1497_v16, 0.0 }
 0x21e   :  { %731 = vperm.xlu0 %1425, %v677_v17  }
 0x21f   :  { %v1499_v19 = vpop.eup %1498  ;;  %736 = vperm.xlu1 %1424, %v678_v18  }
 0x220   :  { %v683_v20 = vsel %vm635_vm8, %v1499_v19, 0.0  ;;  %v1501_v21 = vpop.eup %1500 }
 0x221   :  { %v681_v25 = vsel %vm633_vm10, %v1501_v21, 0.0 }
 0x222   :  { %v1503_v22 = vpop.eup %1502  ;;  %761 = vperm.xlu0 %1425, %v683_v20  }
 0x223   :  { %v682_v23 = vsel %vm634_vm9, %v1503_v22, 0.0  ;;  %v1505_v24 = vpop.eup %1504 }
 0x224   :  { %756 = vperm.xlu1 %1424, %v682_v23   ;;  %v684_v26 = vsel %vm636_vm11, %v1505_v24, 0.0 }
 0x226   :  { %751 = vperm.xlu0 %1425, %v681_v25  }
 0x228   :  { %766 = vperm.xlu1 %1424, %v684_v26  }
 0x288   :  { %v702_v28 = vpop.permute.xlu1 %701 }
 0x289   :  { %v771_v29 = vmul.f32 %v1855_v41, %v702_v28  ;;  %v692_v30 = vpop.permute.xlu0 %691 }
 0x28a   :  { %v769_v31 = vmul.f32 %v692_v30, %v1858_v42 }
 0x28b   :  { %v787_v32 = vmax.f32 %v771_v29, 0.0 }
 0x28c   :  { %v785_v33 = vmax.f32 %v769_v31, 0.0  ;;  %v707_v34 = vpop.permute.xlu1 %706 }
 0x28d   :  { %v1927_v1 = vsel %vm687_vm12, %v787_v32, 0.0  ;;  %v772_v35 = vmul.f32 %v1861_v43, %v707_v34  ;;  %v697_v36 = vpop.permute.xlu0 %696 }
 0x28e   :  { %v1933_v0 = vsel %vm687_vm12, %v785_v33, 0.0  ;;  %v770_v37 = vmul.f32 %v697_v36, %v1864_v44  ;;  %v821_v38 = vmul.f32 %v1927_v1, %v1927_v1  ;;  %v903_v41 = vsel %vm688_vm13, 1.0, %v1927_v1 }
 0x28f   :  { %v788_v39 = vmax.f32 %v772_v35, 0.0  ;;  %v901_v42 = vsel %vm688_vm13, 1.0, %v1933_v0  ;;  %v819_v53 = vmul.f32 %v1933_v0, %v1933_v0 }
 0x290   :  { %v786_v40 = vmax.f32 %v770_v37, 0.0  ;;  %839 = vadd.xlane.f32.xlu0 %v821_v38 }
 0x291   :  { %v1946_v43 = vsel %vm687_vm12, %v788_v39, 0.0  ;;  %v722_v48 = vpop.permute.xlu0 %721 }
 0x292   :  { %v904_v44 = vsel %vm688_vm13, 1.0, %v1946_v43  ;;  %v1953_v50 = vsel %vm687_vm12, %v786_v40, 0.0  ;;  %v775_v51 = vmul.f32 %v1867_v45, %v722_v48  ;;  %v727_v52 = vpop.permute.xlu1 %726  ;;  %v822_v7 = vmul.f32 %v1946_v43, %v1946_v43 }
 0x293   :  { %v1240_v54 = vpack.c.bf16 %v904_v44, %v903_v41  ;;  %v902_v56 = vsel %vm688_vm13, 1.0, %v1953_v50  ;;  %v776_v58 = vmul.f32 %v1872_v47, %v727_v52  ;;  %v820_v60 = vmul.f32 %v1953_v50, %v1953_v50 }
 0x294   :  { %v1235_v62 = vpack.c.bf16 %v902_v56, %v901_v42  ;;  %v791_v63 = vmax.f32 %v775_v51, 0.0  ;;  %835 = vadd.xlane.f32.xlu0 %v819_v53 }
 0x295   :  { %1312 = vst [vmem:[%s2184_s5 + $0x8] sm:$0xff] %v1240_v54   ;;  %v792_v45 = vmax.f32 %v776_v58, 0.0  ;;  %v712_v2 = vpop.permute.xlu0 %711  ;;  %837 = vadd.xlane.f32.xlu1 %v820_v60 }
 0x296   :  { %1236 = vst [vmem:[%s2184_s5] sm:$0xff] %v1235_v62   ;;  %v1972_v47 = vsel %vm687_vm12, %v791_v63, 0.0  ;;  %v773_v3 = vmul.f32 %v712_v2, %v1870_v46  ;;  %v717_v4 = vpop.permute.xlu1 %716 }
 0x297   :  { %v907_v9 = vsel %vm688_vm13, 1.0, %v1972_v47  ;;  %v1982_v10 = vsel %vm687_vm12, %v792_v45, 0.0  ;;  %v774_v12 = vmul.f32 %v717_v4, %v1875_v49  ;;  %v825_v13 = vmul.f32 %v1972_v47, %v1972_v47 }
 0x298   :  { %v908_v46 = vsel %vm688_vm13, 1.0, %v1982_v10  ;;  %v789_v14 = vmax.f32 %v773_v3, 0.0  ;;  %841 = vadd.xlane.f32.xlu0 %v822_v7  ;;  %v826_v20 = vmul.f32 %v1982_v10, %v1982_v10 }
 0x299   :  { %v1250_v15 = vpack.c.bf16 %v908_v46, %v907_v9  ;;  %v790_v16 = vmax.f32 %v774_v12, 0.0  ;;  %v742_v17 = vpop.permute.xlu0 %741  ;;  %847 = vadd.xlane.f32.xlu1 %v825_v13 }
 0x29a   :  { %v1992_v18 = vsel %vm687_vm12, %v789_v14, 0.0  ;;  %v779_v19 = vmul.f32 %v1882_v55, %v742_v17  ;;  %v747_v49 = vpop.permute.xlu1 %746 }
 0x29b   :  { %1314 = vst [vmem:[%s2184_s5 + $0x18] sm:$0xff] %v1250_v15   ;;  %v905_v21 = vsel %vm688_vm13, 1.0, %v1992_v18  ;;  %v2005_v22 = vsel %vm687_vm12, %v790_v16, 0.0  ;;  %v780_v23 = vmul.f32 %v1888_v59, %v747_v49  ;;  %v823_v55 = vmul.f32 %v1992_v18, %v1992_v18 }
 0x29c   :  { %v906_v24 = vsel %vm688_vm13, 1.0, %v2005_v22  ;;  %v795_v25 = vmax.f32 %v779_v19, 0.0  ;;  %849 = vadd.xlane.f32.xlu0 %v826_v20  ;;  %v824_v32 = vmul.f32 %v2005_v22, %v2005_v22 }
 0x29d   :  { %v1245_v26 = vpack.c.bf16 %v906_v24, %v905_v21  ;;  %v796_v28 = vmax.f32 %v780_v23, 0.0  ;;  %v732_v29 = vpop.permute.xlu0 %731  ;;  %843 = vadd.xlane.f32.xlu1 %v823_v55 }
 0x29e   :  { %v2015_v30 = vsel %vm687_vm12, %v795_v25, 0.0  ;;  %v777_v31 = vmul.f32 %v732_v29, %v1886_v57  ;;  %v737_v59 = vpop.permute.xlu1 %736 }
 0x29f   :  { %1313 = vst [vmem:[%s2184_s5 + $0x10] sm:$0xff] %v1245_v26   ;;  %v911_v33 = vsel %vm688_vm13, 1.0, %v2015_v30  ;;  %v2028_v34 = vsel %vm687_vm12, %v796_v28, 0.0  ;;  %v778_v35 = vmul.f32 %v737_v59, %v1891_v61  ;;  %v829_v57 = vmul.f32 %v2015_v30, %v2015_v30 }
 0x2a0   :  { %v912_v36 = vsel %vm688_vm13, 1.0, %v2028_v34  ;;  %v793_v37 = vmax.f32 %v777_v31, 0.0  ;;  %845 = vadd.xlane.f32.xlu0 %v824_v32  ;;  %v830_v61 = vmul.f32 %v2028_v34, %v2028_v34 }
 0x2a1   :  { %v1260_v38 = vpack.c.bf16 %v912_v36, %v911_v33  ;;  %v794_v39 = vmax.f32 %v778_v35, 0.0  ;;  %v762_v40 = vpop.permute.xlu0 %761  ;;  %855 = vadd.xlane.f32.xlu1 %v829_v57 }
 0x2a2   :  { %v2038_v41 = vsel %vm687_vm12, %v793_v37, 0.0  ;;  %v783_v42 = vmul.f32 %v1897_v5, %v762_v40 }
 0x2a3   :  { %1316 = vst [vmem:[%s2184_s5 + $0x28] sm:$0xff] %v1260_v38   ;;  %v909_v48 = vsel %vm688_vm13, 1.0, %v2038_v41  ;;  %v2051_v44 = vsel %vm687_vm12, %v794_v39, 0.0  ;;  %v757_v51 = vpop.permute.xlu1 %756  ;;  %v827_v52 = vmul.f32 %v2038_v41, %v2038_v41 }
 0x2a4   :  { %v910_v5 = vsel %vm688_vm13, 1.0, %v2051_v44  ;;  %v782_v53 = vmul.f32 %v757_v51, %v1907_v11  ;;  %857 = vadd.xlane.f32.xlu0 %v830_v61  ;;  %v799_v58 = vmax.f32 %v783_v42, 0.0  ;;  %v828_v63 = vmul.f32 %v2051_v44, %v2051_v44 }
 0x2a5   :  { %v1255_v54 = vpack.c.bf16 %v910_v5, %v909_v48  ;;  %v752_v56 = vpop.permute.xlu0 %751  ;;  %851 = vadd.xlane.f32.xlu1 %v827_v52 }
 0x2a6   :  { %v798_v60 = vmax.f32 %v782_v53, 0.0  ;;  %v781_v62 = vmul.f32 %v752_v56, %v1901_v6  ;;  %v2074_v6 = vsel %vm687_vm12, %v799_v58, 0.0 }
 0x2a7   :  { %1315 = vst [vmem:[%s2184_s5 + $0x20] sm:$0xff] %v1255_v54   ;;  %v767_v45 = vpop.permute.xlu1 %766  ;;  %v915_v15 = vsel %vm688_vm13, 1.0, %v2074_v6  ;;  %v833_v49 = vmul.f32 %v2074_v6, %v2074_v6 }
 0x2a8   :  { %v2067_v2 = vsel %vm687_vm12, %v798_v60, 0.0  ;;  %v797_v11 = vmax.f32 %v781_v62, 0.0  ;;  %v784_v3 = vmul.f32 %v1904_v8, %v767_v45  ;;  %853 = vadd.xlane.f32.xlu0 %v828_v63 }
 0x2a9   :  { %v832_v4 = vmul.f32 %v2067_v2, %v2067_v2  ;;  %v914_v12 = vsel %vm688_vm13, 1.0, %v2067_v2 }
 0x2aa   :  { %v2078_v7 = vsel %vm687_vm12, %v797_v11, 0.0  ;;  %v800_v9 = vmax.f32 %v784_v3, 0.0 }
 0x2ab   :  { %v913_v8 = vsel %vm688_vm13, 1.0, %v2078_v7  ;;  %v831_v13 = vmul.f32 %v2078_v7, %v2078_v7 }
 0x2ac   :  { %v1265_v46 = vpack.c.bf16 %v914_v12, %v913_v8  ;;  %v2090_v14 = vsel %vm687_vm12, %v800_v9, 0.0  ;;  %861 = vadd.xlane.f32.xlu0 %v832_v4 }
 0x2ad   :  { %v916_v16 = vsel %vm688_vm13, 1.0, %v2090_v14  ;;  %859 = vadd.xlane.f32.xlu1 %v831_v13  ;;  %v834_v17 = vmul.f32 %v2090_v14, %v2090_v14 }
 0x2ae   :  { %1317 = vst [vmem:[%s2184_s5 + $0x30] sm:$0xff] %v1265_v46   ;;  %v1270_v19 = vpack.c.bf16 %v916_v16, %v915_v15 }
 0x2b0   :  { %1318 = vst [vmem:[%s2184_s5 + $0x38] sm:$0xff] %v1270_v19   ;;  %865 = vadd.xlane.f32.xlu0 %v834_v17 }
 0x2b1   :  { %863 = vadd.xlane.f32.xlu1 %v833_v49 }
 0x31d   :  { %v840_v20 = vpop.xlane.xlu0 %839 }
 0x31e   :  { %v869_v21 = vmax.f32 %v840_v20, 1e-24 }
 0x320   :  { %1506 = vrsqrt.f32 %v869_v21 }
 0x321   :  { %v836_v23 = vpop.xlane.xlu0 %835 }
 0x322   :  { %v867_v55 = vmax.f32 %v836_v23, 1e-24  ;;  %v838_v24 = vpop.xlane.xlu1 %837 }
 0x323   :  { %v868_v25 = vmax.f32 %v838_v24, 1e-24 }
 0x324   :  { %1508 = vrsqrt.f32 %v867_v55 }
 0x325   :  { %1510 = vrsqrt.f32 %v868_v25  ;;  %v842_v26 = vpop.xlane.xlu0 %841 }
 0x326   :  { %v870_v28 = vmax.f32 %v842_v26, 1e-24  ;;  %v848_v29 = vpop.xlane.xlu1 %847 }
 0x327   :  { %v873_v31 = vmax.f32 %v848_v29, 1e-24 }
 0x328   :  { %1512 = vrsqrt.f32 %v870_v28 }
 0x329   :  { %1514 = vrsqrt.f32 %v873_v31  ;;  %v850_v59 = vpop.xlane.xlu0 %849 }
 0x32a   :  { %v874_v32 = vmax.f32 %v850_v59, 1e-24  ;;  %v844_v33 = vpop.xlane.xlu1 %843  ;;  %v1507_v57 = vpop.eup %1506 }
 0x32b   :  { %v871_v35 = vmax.f32 %v844_v33, 1e-24  ;;  %v999_v51 = vmul.f32 %v1507_v57, %v1927_v1 }
 0x32c   :  { %1516 = vrsqrt.f32 %v874_v32 }
 0x32d   :  { %1518 = vrsqrt.f32 %v871_v35  ;;  %v846_v36 = vpop.xlane.xlu0 %845  ;;  %v1015_v1 = vsel %vm688_vm13, 1.0, %v999_v51 }
 0x32e   :  { %v1509_v37 = vpop.eup %1508  ;;  %v872_v38 = vmax.f32 %v846_v36, 1e-24  ;;  %v856_v39 = vpop.xlane.xlu1 %855 }
 0x32f   :  { %v1511_v40 = vpop.eup %1510  ;;  %v997_v42 = vmul.f32 %v1509_v37, %v1933_v0  ;;  %v877_v61 = vmax.f32 %v856_v39, 1e-24 }
 0x330   :  { %v998_v48 = vmul.f32 %v1511_v40, %v1953_v50  ;;  %1520 = vrsqrt.f32 %v872_v38 }
 0x331   :  { %v1013_v52 = vsel %vm688_vm13, 1.0, %v997_v42  ;;  %1522 = vrsqrt.f32 %v877_v61  ;;  %v858_v5 = vpop.xlane.xlu0 %857 }
 0x332   :  { %v1513_v53 = vpop.eup %1512  ;;  %v1014_v54 = vsel %vm688_vm13, 1.0, %v998_v48  ;;  %v878_v56 = vmax.f32 %v858_v5, 1e-24  ;;  %v852_v58 = vpop.xlane.xlu1 %851 }
 0x333   :  { %v1515_v60 = vpop.eup %1514  ;;  %v1275_v62 = vpack.c.bf16 %v1014_v54, %v1013_v52  ;;  %v1000_v0 = vmul.f32 %v1513_v53, %v1946_v43  ;;  %v875_v63 = vmax.f32 %v852_v58, 1e-24 }
 0x334   :  { %1524 = vrsqrt.f32 %v878_v56  ;;  %v1003_v45 = vmul.f32 %v1515_v60, %v1972_v47 }
 0x335   :  { %1276 = vst [vmem:[%s2185_s4] sm:$0xff] %v1275_v62   ;;  %v1016_v50 = vsel %vm688_vm13, 1.0, %v1000_v0  ;;  %1526 = vrsqrt.f32 %v875_v63  ;;  %v854_v11 = vpop.xlane.xlu0 %853 }
 0x336   :  { %v1517_v3 = vpop.eup %1516  ;;  %v1280_v4 = vpack.c.bf16 %v1016_v50, %v1015_v1  ;;  %v876_v9 = vmax.f32 %v854_v11, 1e-24  ;;  %v1019_v8 = vsel %vm688_vm13, 1.0, %v1003_v45 }
 0x337   :  { %v1519_v43 = vpop.eup %1518  ;;  %v1004_v12 = vmul.f32 %v1517_v3, %v1982_v10 }
 0x338   :  { %1319 = vst [vmem:[%s2185_s4 + $0x8] sm:$0xff] %v1280_v4   ;;  %1528 = vrsqrt.f32 %v876_v9  ;;  %v1001_v47 = vmul.f32 %v1519_v43, %v1992_v18 }
 0x339   :  { %v1020_v13 = vsel %vm688_vm13, 1.0, %v1004_v12  ;;  %v862_v46 = vpop.xlane.xlu0 %861 }
 0x33a   :  { %v1521_v15 = vpop.eup %1520  ;;  %v1290_v16 = vpack.c.bf16 %v1020_v13, %v1019_v8  ;;  %v880_v17 = vmax.f32 %v862_v46, 1e-24  ;;  %v860_v19 = vpop.xlane.xlu1 %859  ;;  %v1017_v21 = vsel %vm688_vm13, 1.0, %v1001_v47 }
 0x33b   :  { %v1523_v49 = vpop.eup %1522  ;;  %v1002_v10 = vmul.f32 %v1521_v15, %v2005_v22  ;;  %v879_v20 = vmax.f32 %v860_v19, 1e-24 }
 0x33c   :  { %1321 = vst [vmem:[%s2185_s4 + $0x18] sm:$0xff] %v1290_v16   ;;  %1530 = vrsqrt.f32 %v880_v17  ;;  %v1007_v23 = vmul.f32 %v1523_v49, %v2015_v30 }
 0x33d   :  { %v1018_v18 = vsel %vm688_vm13, 1.0, %v1002_v10  ;;  %1532 = vrsqrt.f32 %v879_v20  ;;  %v866_v55 = vpop.xlane.xlu0 %865 }
 0x33e   :  { %v1525_v24 = vpop.eup %1524  ;;  %v1285_v25 = vpack.c.bf16 %v1018_v18, %v1017_v21  ;;  %v882_v26 = vmax.f32 %v866_v55, 1e-24  ;;  %v864_v22 = vpop.xlane.xlu1 %863  ;;  %v1023_v59 = vsel %vm688_vm13, 1.0, %v1007_v23 }
 0x33f   :  { %v1527_v28 = vpop.eup %1526  ;;  %v1008_v29 = vmul.f32 %v1525_v24, %v2028_v34  ;;  %v881_v31 = vmax.f32 %v864_v22, 1e-24 }
 0x340   :  { %1320 = vst [vmem:[%s2185_s4 + $0x10] sm:$0xff] %v1285_v25   ;;  %1534 = vrsqrt.f32 %v882_v26  ;;  %v1005_v32 = vmul.f32 %v1527_v28, %v2038_v41 }
 0x341   :  { %v1024_v30 = vsel %vm688_vm13, 1.0, %v1008_v29  ;;  %1536 = vrsqrt.f32 %v881_v31 }
 0x342   :  { %v1529_v33 = vpop.eup %1528  ;;  %v1300_v35 = vpack.c.bf16 %v1024_v30, %v1023_v59  ;;  %v1021_v34 = vsel %vm688_vm13, 1.0, %v1005_v32 }
 0x343   :  { %v1006_v57 = vmul.f32 %v1529_v33, %v2051_v44 }
 0x344   :  { %1323 = vst [vmem:[%s2185_s4 + $0x28] sm:$0xff] %v1300_v35  }
 0x345   :  { %v1022_v36 = vsel %vm688_vm13, 1.0, %v1006_v57 }
 0x346   :  { %v1531_v37 = vpop.eup %1530  ;;  %v1295_v38 = vpack.c.bf16 %v1022_v36, %v1021_v34 }
 0x347   :  { %v1533_v39 = vpop.eup %1532  ;;  %v1010_v41 = vmul.f32 %v1531_v37, %v2067_v2 }
 0x348   :  { %1322 = vst [vmem:[%s2185_s4 + $0x20] sm:$0xff] %v1295_v38   ;;  %v1009_v44 = vmul.f32 %v1533_v39, %v2078_v7 }
 0x349   :  { %v1026_v40 = vsel %vm688_vm13, 1.0, %v1010_v41 }
 0x34a   :  { %v1535_v42 = vpop.eup %1534  ;;  %v1025_v61 = vsel %vm688_vm13, 1.0, %v1009_v44 }
 0x34b   :  { %v1537_v48 = vpop.eup %1536  ;;  %v1305_v51 = vpack.c.bf16 %v1026_v40, %v1025_v61  ;;  %v1012_v52 = vmul.f32 %v1535_v42, %v2090_v14 }
 0x34c   :  { %v1011_v5 = vmul.f32 %v1537_v48, %v2074_v6 }
 0x34d   :  { %1324 = vst [vmem:[%s2185_s4 + $0x30] sm:$0xff] %v1305_v51   ;;  %v1028_v2 = vsel %vm688_vm13, 1.0, %v1012_v52 }
 0x34e   :  { %v1027_v7 = vsel %vm688_vm13, 1.0, %v1011_v5 }
 0x34f   :  { %v1310_v53 = vpack.c.bf16 %v1028_v2, %v1027_v7 }
 0x351   :  { %1325 = vst [vmem:[%s2185_s4 + $0x38] sm:$0xff] %v1310_v53  }

</bundles_post_ra>
